<compile_context>
chip_gen: v7x
topology: tpu7x:2x2x1
jax: 0.10.0
libtpu: 0.0.40
codegen_flags: <defaults>
</compile_context>

<pallas_src>
import functools

import jax
import jax.numpy as jnp
import numpy as np
from jax.experimental import pallas as pl
from jax.experimental.pallas import tpu as pltpu

# ----------------------------------------------------------------------------
# Module hyper-parameters (small shapes consistent with the PyTorch module).
# ----------------------------------------------------------------------------
NUM_PROP = 45
NUM_HIST = 10                      # tsteps == 10 branch of StateHistoryEncoder
NUM_ACTIONS = 12
PRIV_OUT = 20                      # priv_encoder_output_dim
ACTOR_HIDDEN = (256, 256, 256)

CH = 10                            # StateHistoryEncoder channel_size
ENC_OUT = 3 * CH                   # 30
CONV1_OUT = 2 * CH                 # 20
CONV1_K, CONV1_STRIDE = 4, 2
CONV1_LOUT = (NUM_HIST - CONV1_K) // CONV1_STRIDE + 1          # 4
CONV2_OUT = CH                     # 10
CONV2_K, CONV2_STRIDE = 2, 1
CONV2_LOUT = (CONV1_LOUT - CONV2_K) // CONV2_STRIDE + 1        # 3

_VMEM = pl.BlockSpec(memory_space=pltpu.MemorySpace.VMEM)      # whole array in VMEM


# ----------------------------------------------------------------------------
# Single fused Pallas kernel: whole CnnActor forward pass.
# ----------------------------------------------------------------------------
def _elu(y):
    # torch.nn.ELU(alpha=1)
    return jnp.where(y > 0, y, jnp.exp(jnp.minimum(y, 0.0)) - 1.0)


def _cnn_actor_kernel(obs_ref, hist_ref, enc_w, enc_b, c1w, c1b, c2w, c2b,
                      low, lob, a0o, a0l, a0b, a1w, a1b, a2w, a2b, a3w, a3b,
                      out_ref):
    f32 = jnp.float32

    def dot(a, b):
        return jnp.dot(a, b, preferred_element_type=f32)

    # --- StateHistoryEncoder.encoder: per-timestep Linear + ELU -------------
    # hist_ref: (T, B, num_prop); index the leading axis so no value slicing
    # along sublanes is needed.
    t_steps = hist_ref.shape[0]
    proj = [_elu(dot(hist_ref[t], enc_w[...]) + enc_b[...]) for t in range(t_steps)]

    # --- Conv1d(3*CH -> 2*CH, k=4, stride=2) as tap-sum matmuls + ELU -------
    c1 = []
    for t0 in range(CONV1_LOUT):
        acc = c1b[...]
        for k in range(CONV1_K):
            acc = acc + dot(proj[t0 * CONV1_STRIDE + k], c1w[k])
        c1.append(_elu(acc))

    # --- Conv1d(2*CH -> CH, k=2, stride=1) + ELU -----------------------------
    c2 = []
    for s in range(CONV2_LOUT):
        acc = c2b[...]
        for k in range(CONV2_K):
            acc = acc + dot(c1[s + CONV2_STRIDE * k], c2w[k])
        c2.append(_elu(acc))

    # --- Flatten (torch channel-major layout folded into weight slices)
    #     + linear_output + ELU  ->  latent (B, PRIV_OUT) ---------------------
    lat = lob[...]
    for l in range(CONV2_LOUT):
        lat = lat + dot(c2[l], low[l])
    lat = _elu(lat)

    # --- actor MLP on cat([obs, latent], dim=1) ------------------------------
    # The concat is folded into a split first-layer weight (a0o / a0l), so no
    # lane-concat is needed inside the kernel.
    h = _elu(dot(obs_ref[...], a0o[...]) + dot(lat, a0l[...]) + a0b[...])
    h = _elu(dot(h, a1w[...]) + a1b[...])
    h = _elu(dot(h, a2w[...]) + a2b[...])
    out_ref[...] = dot(h, a3w[...]) + a3b[...]


def cnn_actor_forward(kp, obs, hist):
    """obs: (B, num_prop); hist: (B, num_hist, num_prop) -> mean (B, num_actions)."""
    b = obs.shape[0]
    hist_tbp = jnp.transpose(hist, (1, 0, 2))          # (T, B, num_prop), plain-JAX glue
    args = (obs, hist_tbp,
            kp["enc_w"], kp["enc_b"],
            kp["c1w"], kp["c1b"], kp["c2w"], kp["c2b"],
            kp["low"], kp["lob"],
            kp["a0o"], kp["a0l"], kp["a0b"],
            kp["a1w"], kp["a1b"], kp["a2w"], kp["a2b"], kp["a3w"], kp["a3b"])
    return pl.pallas_call(
        _cnn_actor_kernel,
        out_shape=jax.ShapeDtypeStruct((b, NUM_ACTIONS), jnp.float32),
        in_specs=[_VMEM] * len(args),
        out_specs=_VMEM,
    )(*args)


# ----------------------------------------------------------------------------
# Deterministic parameters in PyTorch layout, plus kernel-layout conversion.
# ----------------------------------------------------------------------------
def _key_iter(key):
    while True:
        key, sub = jax.random.split(key)
        yield sub


def init_torch_params(key):
    ks = _key_iter(key)

    def lin(out_f, in_f):
        return (0.1 * jax.random.normal(next(ks), (out_f, in_f), jnp.float32),
                0.1 * jax.random.normal(next(ks), (out_f,), jnp.float32))

    def conv(out_c, in_c, k):
        return (0.1 * jax.random.normal(next(ks), (out_c, in_c, k), jnp.float32),
                0.1 * jax.random.normal(next(ks), (out_c,), jnp.float32))

    p = {}
    p["enc_w"], p["enc_b"] = lin(ENC_OUT, NUM_PROP)                 # encoder Linear
    p["c1_w"], p["c1_b"] = conv(CONV1_OUT, ENC_OUT, CONV1_K)        # Conv1d #1
    p["c2_w"], p["c2_b"] = conv(CONV2_OUT, CONV1_OUT, CONV2_K)      # Conv1d #2
    p["lo_w"], p["lo_b"] = lin(PRIV_OUT, CONV2_OUT * CONV2_LOUT)    # linear_output
    dims = [NUM_PROP + PRIV_OUT] + list(ACTOR_HIDDEN) + [NUM_ACTIONS]
    for i in range(len(dims) - 1):
        p[f"a{i}_w"], p[f"a{i}_b"] = lin(dims[i + 1], dims[i])      # actor MLP
    return p


def to_kernel_params(tp):
    """Re-layout torch-style weights once at init (y = x @ W + b layout,
    conv taps split, Flatten permutation folded, first actor layer split)."""
    kp = {
        "enc_w": tp["enc_w"].T,
        "enc_b": tp["enc_b"].reshape(1, -1),
        "c1w": jnp.stack([tp["c1_w"][:, :, k].T for k in range(CONV1_K)], axis=0),
        "c1b": tp["c1_b"].reshape(1, -1),
        "c2w": jnp.stack([tp["c2_w"][:, :, k].T for k in range(CONV2_K)], axis=0),
        "c2b": tp["c2_b"].reshape(1, -1),
        # torch Flatten index f = c*CONV2_LOUT + l  ->  per-position weight slab
        "low": jnp.stack([tp["lo_w"][:, l::CONV2_LOUT].T for l in range(CONV2_LOUT)], axis=0),
        "lob": tp["lo_b"].reshape(1, -1),
        "a0o": tp["a0_w"][:, :NUM_PROP].T,
        "a0l": tp["a0_w"][:, NUM_PROP:].T,
        "a0b": tp["a0_b"].reshape(1, -1),
    }
    for i in (1, 2, 3):
        kp[f"a{i}w"] = tp[f"a{i}_w"].T
        kp[f"a{i}b"] = tp[f"a{i}_b"].reshape(1, -1)
    return kp


# ----------------------------------------------------------------------------
# Pure-JAX reference (torch layout & semantics) for correctness checking.
# ----------------------------------------------------------------------------
def _ref_dot(a, b):
    return jnp.dot(a, b, precision=jax.lax.Precision.HIGHEST)


def reference_forward(tp, obs, hist):
    b, t, p = hist.shape
    proj = _elu(_ref_dot(hist.reshape(b * t, p), tp["enc_w"].T) + tp["enc_b"])
    x = proj.reshape(b, t, ENC_OUT).transpose(0, 2, 1)              # (B, C, T)

    def conv1d(x, w, bias, stride):                                  # torch Conv1d
        cout, cin, k = w.shape
        lout = (x.shape[-1] - k) // stride + 1
        outs = []
        for t0 in range(lout):
            win = x[:, :, t0 * stride:t0 * stride + k].reshape(b, cin * k)
            outs.append(_ref_dot(win, w.reshape(cout, cin * k).T) + bias)
        return jnp.stack(outs, axis=-1)                              # (B, Cout, Lout)

    y = _elu(conv1d(x, tp["c1_w"], tp["c1_b"], CONV1_STRIDE))
    y = _elu(conv1d(y, tp["c2_w"], tp["c2_b"], CONV2_STRIDE))
    lat = _elu(_ref_dot(y.reshape(b, -1), tp["lo_w"].T) + tp["lo_b"])
    h = jnp.concatenate([obs, lat], axis=1)
    h = _elu(_ref_dot(h, tp["a0_w"].T) + tp["a0_b"])
    h = _elu(_ref_dot(h, tp["a1_w"].T) + tp["a1_b"])
    h = _elu(_ref_dot(h, tp["a2_w"].T) + tp["a2_b"])
    return _ref_dot(h, tp["a3_w"].T) + tp["a3_b"]


# ----------------------------------------------------------------------------
if __name__ == "__main__":
    root = jax.random.PRNGKey(0)
    k_obs, k_hist, k_par = jax.random.split(root, 3)

    B = 2
    obs = jax.random.normal(k_obs, (B, NUM_PROP), jnp.float32)
    hist = jax.random.normal(k_hist, (B, NUM_HIST, NUM_PROP), jnp.float32)

    tp = init_torch_params(k_par)
    kp = to_kernel_params(tp)

    mean = jax.jit(cnn_actor_forward)(kp, obs, hist)
    mean = jax.block_until_ready(mean)

    ref = jax.block_until_ready(reference_forward(tp, obs, hist))

    assert mean.shape == (B, NUM_ACTIONS)
    assert bool(jnp.all(jnp.isfinite(mean)))
    np.testing.assert_allclose(np.asarray(mean), np.asarray(ref), rtol=5e-2, atol=5e-2)
    print("KERNEL_OK")
</pallas_src>

<mosaic_0001>
module attributes {stable_mosaic.version = 11 : i64} {
  func.func @_cnn_actor_kernel(%arg0: memref<2x45xf32, #tpu.memory_space<vmem>>, %arg1: memref<10x2x45xf32, #tpu.memory_space<vmem>>, %arg2: memref<45x30xf32, #tpu.memory_space<vmem>>, %arg3: memref<1x30xf32, #tpu.memory_space<vmem>>, %arg4: memref<4x30x20xf32, #tpu.memory_space<vmem>>, %arg5: memref<1x20xf32, #tpu.memory_space<vmem>>, %arg6: memref<2x20x10xf32, #tpu.memory_space<vmem>>, %arg7: memref<1x10xf32, #tpu.memory_space<vmem>>, %arg8: memref<3x10x20xf32, #tpu.memory_space<vmem>>, %arg9: memref<1x20xf32, #tpu.memory_space<vmem>>, %arg10: memref<45x256xf32, #tpu.memory_space<vmem>>, %arg11: memref<20x256xf32, #tpu.memory_space<vmem>>, %arg12: memref<1x256xf32, #tpu.memory_space<vmem>>, %arg13: memref<256x256xf32, #tpu.memory_space<vmem>>, %arg14: memref<1x256xf32, #tpu.memory_space<vmem>>, %arg15: memref<256x256xf32, #tpu.memory_space<vmem>>, %arg16: memref<1x256xf32, #tpu.memory_space<vmem>>, %arg17: memref<256x12xf32, #tpu.memory_space<vmem>>, %arg18: memref<1x12xf32, #tpu.memory_space<vmem>>, %arg19: memref<2x12xf32, #tpu.memory_space<vmem>>) attributes {dimension_semantics = [], scalar_prefetch = 0 : i64, scratch_operands = 0 : i64, tpu.core_type = #tpu.core_type<tc>} {
    %c0 = arith.constant 0 : index
    %c0_0 = arith.constant 0 : index
    %c0_1 = arith.constant 0 : index
    %0 = vector.load %arg1[%c0, %c0_0, %c0_1] : memref<10x2x45xf32, #tpu.memory_space<vmem>>, vector<1x2x45xf32>
    %1 = vector.shape_cast %0 : vector<1x2x45xf32> to vector<2x45xf32>
    %c0_2 = arith.constant 0 : index
    %c0_3 = arith.constant 0 : index
    %2 = vector.load %arg2[%c0_2, %c0_3] : memref<45x30xf32, #tpu.memory_space<vmem>>, vector<45x30xf32>
    %cst = arith.constant dense<0.000000e+00> : vector<2x30xf32>
    %3 = tpu.matmul %1, %2, %cst {dimension_numbers = #tpu.dot_dimension_numbers<[1], [0], [0], [1], [0, 0, 1, 1], [], []>} : vector<2x45xf32>, vector<45x30xf32>, vector<2x30xf32> -> vector<2x30xf32>
    %c0_4 = arith.constant 0 : index
    %c0_5 = arith.constant 0 : index
    %4 = vector.load %arg3[%c0_4, %c0_5] : memref<1x30xf32, #tpu.memory_space<vmem>>, vector<1x30xf32>
    %5 = vector.broadcast %4 : vector<1x30xf32> to vector<2x30xf32>
    %6 = arith.addf %3, %5 : vector<2x30xf32>
    %cst_6 = arith.constant 0.000000e+00 : f32
    %7 = vector.broadcast %cst_6 : f32 to vector<2x30xf32>
    %8 = arith.cmpf ogt, %6, %7 : vector<2x30xf32>
    %cst_7 = arith.constant 0.000000e+00 : f32
    %9 = vector.broadcast %cst_7 : f32 to vector<2x30xf32>
    %10 = arith.minimumf %6, %9 : vector<2x30xf32>
    %11 = math.exp %10 : vector<2x30xf32>
    %cst_8 = arith.constant 1.000000e+00 : f32
    %12 = vector.broadcast %cst_8 : f32 to vector<2x30xf32>
    %13 = arith.subf %11, %12 : vector<2x30xf32>
    %14 = arith.select %8, %6, %13 : vector<2x30xi1>, vector<2x30xf32>
    %c1 = arith.constant 1 : index
    %c0_9 = arith.constant 0 : index
    %c0_10 = arith.constant 0 : index
    %15 = vector.load %arg1[%c1, %c0_9, %c0_10] : memref<10x2x45xf32, #tpu.memory_space<vmem>>, vector<1x2x45xf32>
    %16 = vector.shape_cast %15 : vector<1x2x45xf32> to vector<2x45xf32>
    %c0_11 = arith.constant 0 : index
    %c0_12 = arith.constant 0 : index
    %17 = vector.load %arg2[%c0_11, %c0_12] : memref<45x30xf32, #tpu.memory_space<vmem>>, vector<45x30xf32>
    %cst_13 = arith.constant dense<0.000000e+00> : vector<2x30xf32>
    %18 = tpu.matmul %16, %17, %cst_13 {dimension_numbers = #tpu.dot_dimension_numbers<[1], [0], [0], [1], [0, 0, 1, 1], [], []>} : vector<2x45xf32>, vector<45x30xf32>, vector<2x30xf32> -> vector<2x30xf32>
    %c0_14 = arith.constant 0 : index
    %c0_15 = arith.constant 0 : index
    %19 = vector.load %arg3[%c0_14, %c0_15] : memref<1x30xf32, #tpu.memory_space<vmem>>, vector<1x30xf32>
    %20 = vector.broadcast %19 : vector<1x30xf32> to vector<2x30xf32>
    %21 = arith.addf %18, %20 : vector<2x30xf32>
    %cst_16 = arith.constant 0.000000e+00 : f32
    %22 = vector.broadcast %cst_16 : f32 to vector<2x30xf32>
    %23 = arith.cmpf ogt, %21, %22 : vector<2x30xf32>
    %cst_17 = arith.constant 0.000000e+00 : f32
    %24 = vector.broadcast %cst_17 : f32 to vector<2x30xf32>
    %25 = arith.minimumf %21, %24 : vector<2x30xf32>
    %26 = math.exp %25 : vector<2x30xf32>
    %cst_18 = arith.constant 1.000000e+00 : f32
    %27 = vector.broadcast %cst_18 : f32 to vector<2x30xf32>
    %28 = arith.subf %26, %27 : vector<2x30xf32>
    %29 = arith.select %23, %21, %28 : vector<2x30xi1>, vector<2x30xf32>
    %c2 = arith.constant 2 : index
    %c0_19 = arith.constant 0 : index
    %c0_20 = arith.constant 0 : index
    %30 = vector.load %arg1[%c2, %c0_19, %c0_20] : memref<10x2x45xf32, #tpu.memory_space<vmem>>, vector<1x2x45xf32>
    %31 = vector.shape_cast %30 : vector<1x2x45xf32> to vector<2x45xf32>
    %c0_21 = arith.constant 0 : index
    %c0_22 = arith.constant 0 : index
    %32 = vector.load %arg2[%c0_21, %c0_22] : memref<45x30xf32, #tpu.memory_space<vmem>>, vector<45x30xf32>
    %cst_23 = arith.constant dense<0.000000e+00> : vector<2x30xf32>
    %33 = tpu.matmul %31, %32, %cst_23 {dimension_numbers = #tpu.dot_dimension_numbers<[1], [0], [0], [1], [0, 0, 1, 1], [], []>} : vector<2x45xf32>, vector<45x30xf32>, vector<2x30xf32> -> vector<2x30xf32>
    %c0_24 = arith.constant 0 : index
    %c0_25 = arith.constant 0 : index
    %34 = vector.load %arg3[%c0_24, %c0_25] : memref<1x30xf32, #tpu.memory_space<vmem>>, vector<1x30xf32>
    %35 = vector.broadcast %34 : vector<1x30xf32> to vector<2x30xf32>
    %36 = arith.addf %33, %35 : vector<2x30xf32>
    %cst_26 = arith.constant 0.000000e+00 : f32
    %37 = vector.broadcast %cst_26 : f32 to vector<2x30xf32>
    %38 = arith.cmpf ogt, %36, %37 : vector<2x30xf32>
    %cst_27 = arith.constant 0.000000e+00 : f32
    %39 = vector.broadcast %cst_27 : f32 to vector<2x30xf32>
    %40 = arith.minimumf %36, %39 : vector<2x30xf32>
    %41 = math.exp %40 : vector<2x30xf32>
    %cst_28 = arith.constant 1.000000e+00 : f32
    %42 = vector.broadcast %cst_28 : f32 to vector<2x30xf32>
    %43 = arith.subf %41, %42 : vector<2x30xf32>
    %44 = arith.select %38, %36, %43 : vector<2x30xi1>, vector<2x30xf32>
    %c3 = arith.constant 3 : index
    %c0_29 = arith.constant 0 : index
    %c0_30 = arith.constant 0 : index
    %45 = vector.load %arg1[%c3, %c0_29, %c0_30] : memref<10x2x45xf32, #tpu.memory_space<vmem>>, vector<1x2x45xf32>
    %46 = vector.shape_cast %45 : vector<1x2x45xf32> to vector<2x45xf32>
    %c0_31 = arith.constant 0 : index
    %c0_32 = arith.constant 0 : index
    %47 = vector.load %arg2[%c0_31, %c0_32] : memref<45x30xf32, #tpu.memory_space<vmem>>, vector<45x30xf32>
    %cst_33 = arith.constant dense<0.000000e+00> : vector<2x30xf32>
    %48 = tpu.matmul %46, %47, %cst_33 {dimension_numbers = #tpu.dot_dimension_numbers<[1], [0], [0], [1], [0, 0, 1, 1], [], []>} : vector<2x45xf32>, vector<45x30xf32>, vector<2x30xf32> -> vector<2x30xf32>
    %c0_34 = arith.constant 0 : index
    %c0_35 = arith.constant 0 : index
    %49 = vector.load %arg3[%c0_34, %c0_35] : memref<1x30xf32, #tpu.memory_space<vmem>>, vector<1x30xf32>
    %50 = vector.broadcast %49 : vector<1x30xf32> to vector<2x30xf32>
    %51 = arith.addf %48, %50 : vector<2x30xf32>
    %cst_36 = arith.constant 0.000000e+00 : f32
    %52 = vector.broadcast %cst_36 : f32 to vector<2x30xf32>
    %53 = arith.cmpf ogt, %51, %52 : vector<2x30xf32>
    %cst_37 = arith.constant 0.000000e+00 : f32
    %54 = vector.broadcast %cst_37 : f32 to vector<2x30xf32>
    %55 = arith.minimumf %51, %54 : vector<2x30xf32>
    %56 = math.exp %55 : vector<2x30xf32>
    %cst_38 = arith.constant 1.000000e+00 : f32
    %57 = vector.broadcast %cst_38 : f32 to vector<2x30xf32>
    %58 = arith.subf %56, %57 : vector<2x30xf32>
    %59 = arith.select %53, %51, %58 : vector<2x30xi1>, vector<2x30xf32>
    %c4 = arith.constant 4 : index
    %c0_39 = arith.constant 0 : index
    %c0_40 = arith.constant 0 : index
    %60 = vector.load %arg1[%c4, %c0_39, %c0_40] : memref<10x2x45xf32, #tpu.memory_space<vmem>>, vector<1x2x45xf32>
    %61 = vector.shape_cast %60 : vector<1x2x45xf32> to vector<2x45xf32>
    %c0_41 = arith.constant 0 : index
    %c0_42 = arith.constant 0 : index
    %62 = vector.load %arg2[%c0_41, %c0_42] : memref<45x30xf32, #tpu.memory_space<vmem>>, vector<45x30xf32>
    %cst_43 = arith.constant dense<0.000000e+00> : vector<2x30xf32>
    %63 = tpu.matmul %61, %62, %cst_43 {dimension_numbers = #tpu.dot_dimension_numbers<[1], [0], [0], [1], [0, 0, 1, 1], [], []>} : vector<2x45xf32>, vector<45x30xf32>, vector<2x30xf32> -> vector<2x30xf32>
    %c0_44 = arith.constant 0 : index
    %c0_45 = arith.constant 0 : index
    %64 = vector.load %arg3[%c0_44, %c0_45] : memref<1x30xf32, #tpu.memory_space<vmem>>, vector<1x30xf32>
    %65 = vector.broadcast %64 : vector<1x30xf32> to vector<2x30xf32>
    %66 = arith.addf %63, %65 : vector<2x30xf32>
    %cst_46 = arith.constant 0.000000e+00 : f32
    %67 = vector.broadcast %cst_46 : f32 to vector<2x30xf32>
    %68 = arith.cmpf ogt, %66, %67 : vector<2x30xf32>
    %cst_47 = arith.constant 0.000000e+00 : f32
    %69 = vector.broadcast %cst_47 : f32 to vector<2x30xf32>
    %70 = arith.minimumf %66, %69 : vector<2x30xf32>
    %71 = math.exp %70 : vector<2x30xf32>
    %cst_48 = arith.constant 1.000000e+00 : f32
    %72 = vector.broadcast %cst_48 : f32 to vector<2x30xf32>
    %73 = arith.subf %71, %72 : vector<2x30xf32>
    %74 = arith.select %68, %66, %73 : vector<2x30xi1>, vector<2x30xf32>
    %c5 = arith.constant 5 : index
    %c0_49 = arith.constant 0 : index
    %c0_50 = arith.constant 0 : index
    %75 = vector.load %arg1[%c5, %c0_49, %c0_50] : memref<10x2x45xf32, #tpu.memory_space<vmem>>, vector<1x2x45xf32>
    %76 = vector.shape_cast %75 : vector<1x2x45xf32> to vector<2x45xf32>
    %c0_51 = arith.constant 0 : index
    %c0_52 = arith.constant 0 : index
    %77 = vector.load %arg2[%c0_51, %c0_52] : memref<45x30xf32, #tpu.memory_space<vmem>>, vector<45x30xf32>
    %cst_53 = arith.constant dense<0.000000e+00> : vector<2x30xf32>
    %78 = tpu.matmul %76, %77, %cst_53 {dimension_numbers = #tpu.dot_dimension_numbers<[1], [0], [0], [1], [0, 0, 1, 1], [], []>} : vector<2x45xf32>, vector<45x30xf32>, vector<2x30xf32> -> vector<2x30xf32>
    %c0_54 = arith.constant 0 : index
    %c0_55 = arith.constant 0 : index
    %79 = vector.load %arg3[%c0_54, %c0_55] : memref<1x30xf32, #tpu.memory_space<vmem>>, vector<1x30xf32>
    %80 = vector.broadcast %79 : vector<1x30xf32> to vector<2x30xf32>
    %81 = arith.addf %78, %80 : vector<2x30xf32>
    %cst_56 = arith.constant 0.000000e+00 : f32
    %82 = vector.broadcast %cst_56 : f32 to vector<2x30xf32>
    %83 = arith.cmpf ogt, %81, %82 : vector<2x30xf32>
    %cst_57 = arith.constant 0.000000e+00 : f32
    %84 = vector.broadcast %cst_57 : f32 to vector<2x30xf32>
    %85 = arith.minimumf %81, %84 : vector<2x30xf32>
    %86 = math.exp %85 : vector<2x30xf32>
    %cst_58 = arith.constant 1.000000e+00 : f32
    %87 = vector.broadcast %cst_58 : f32 to vector<2x30xf32>
    %88 = arith.subf %86, %87 : vector<2x30xf32>
    %89 = arith.select %83, %81, %88 : vector<2x30xi1>, vector<2x30xf32>
    %c6 = arith.constant 6 : index
    %c0_59 = arith.constant 0 : index
    %c0_60 = arith.constant 0 : index
    %90 = vector.load %arg1[%c6, %c0_59, %c0_60] : memref<10x2x45xf32, #tpu.memory_space<vmem>>, vector<1x2x45xf32>
    %91 = vector.shape_cast %90 : vector<1x2x45xf32> to vector<2x45xf32>
    %c0_61 = arith.constant 0 : index
    %c0_62 = arith.constant 0 : index
    %92 = vector.load %arg2[%c0_61, %c0_62] : memref<45x30xf32, #tpu.memory_space<vmem>>, vector<45x30xf32>
    %cst_63 = arith.constant dense<0.000000e+00> : vector<2x30xf32>
    %93 = tpu.matmul %91, %92, %cst_63 {dimension_numbers = #tpu.dot_dimension_numbers<[1], [0], [0], [1], [0, 0, 1, 1], [], []>} : vector<2x45xf32>, vector<45x30xf32>, vector<2x30xf32> -> vector<2x30xf32>
    %c0_64 = arith.constant 0 : index
    %c0_65 = arith.constant 0 : index
    %94 = vector.load %arg3[%c0_64, %c0_65] : memref<1x30xf32, #tpu.memory_space<vmem>>, vector<1x30xf32>
    %95 = vector.broadcast %94 : vector<1x30xf32> to vector<2x30xf32>
    %96 = arith.addf %93, %95 : vector<2x30xf32>
    %cst_66 = arith.constant 0.000000e+00 : f32
    %97 = vector.broadcast %cst_66 : f32 to vector<2x30xf32>
    %98 = arith.cmpf ogt, %96, %97 : vector<2x30xf32>
    %cst_67 = arith.constant 0.000000e+00 : f32
    %99 = vector.broadcast %cst_67 : f32 to vector<2x30xf32>
    %100 = arith.minimumf %96, %99 : vector<2x30xf32>
    %101 = math.exp %100 : vector<2x30xf32>
    %cst_68 = arith.constant 1.000000e+00 : f32
    %102 = vector.broadcast %cst_68 : f32 to vector<2x30xf32>
    %103 = arith.subf %101, %102 : vector<2x30xf32>
    %104 = arith.select %98, %96, %103 : vector<2x30xi1>, vector<2x30xf32>
    %c7 = arith.constant 7 : index
    %c0_69 = arith.constant 0 : index
    %c0_70 = arith.constant 0 : index
    %105 = vector.load %arg1[%c7, %c0_69, %c0_70] : memref<10x2x45xf32, #tpu.memory_space<vmem>>, vector<1x2x45xf32>
    %106 = vector.shape_cast %105 : vector<1x2x45xf32> to vector<2x45xf32>
    %c0_71 = arith.constant 0 : index
    %c0_72 = arith.constant 0 : index
    %107 = vector.load %arg2[%c0_71, %c0_72] : memref<45x30xf32, #tpu.memory_space<vmem>>, vector<45x30xf32>
    %cst_73 = arith.constant dense<0.000000e+00> : vector<2x30xf32>
    %108 = tpu.matmul %106, %107, %cst_73 {dimension_numbers = #tpu.dot_dimension_numbers<[1], [0], [0], [1], [0, 0, 1, 1], [], []>} : vector<2x45xf32>, vector<45x30xf32>, vector<2x30xf32> -> vector<2x30xf32>
    %c0_74 = arith.constant 0 : index
    %c0_75 = arith.constant 0 : index
    %109 = vector.load %arg3[%c0_74, %c0_75] : memref<1x30xf32, #tpu.memory_space<vmem>>, vector<1x30xf32>
    %110 = vector.broadcast %109 : vector<1x30xf32> to vector<2x30xf32>
    %111 = arith.addf %108, %110 : vector<2x30xf32>
    %cst_76 = arith.constant 0.000000e+00 : f32
    %112 = vector.broadcast %cst_76 : f32 to vector<2x30xf32>
    %113 = arith.cmpf ogt, %111, %112 : vector<2x30xf32>
    %cst_77 = arith.constant 0.000000e+00 : f32
    %114 = vector.broadcast %cst_77 : f32 to vector<2x30xf32>
    %115 = arith.minimumf %111, %114 : vector<2x30xf32>
    %116 = math.exp %115 : vector<2x30xf32>
    %cst_78 = arith.constant 1.000000e+00 : f32
    %117 = vector.broadcast %cst_78 : f32 to vector<2x30xf32>
    %118 = arith.subf %116, %117 : vector<2x30xf32>
    %119 = arith.select %113, %111, %118 : vector<2x30xi1>, vector<2x30xf32>
    %c8 = arith.constant 8 : index
    %c0_79 = arith.constant 0 : index
    %c0_80 = arith.constant 0 : index
    %120 = vector.load %arg1[%c8, %c0_79, %c0_80] : memref<10x2x45xf32, #tpu.memory_space<vmem>>, vector<1x2x45xf32>
    %121 = vector.shape_cast %120 : vector<1x2x45xf32> to vector<2x45xf32>
    %c0_81 = arith.constant 0 : index
    %c0_82 = arith.constant 0 : index
    %122 = vector.load %arg2[%c0_81, %c0_82] : memref<45x30xf32, #tpu.memory_space<vmem>>, vector<45x30xf32>
    %cst_83 = arith.constant dense<0.000000e+00> : vector<2x30xf32>
    %123 = tpu.matmul %121, %122, %cst_83 {dimension_numbers = #tpu.dot_dimension_numbers<[1], [0], [0], [1], [0, 0, 1, 1], [], []>} : vector<2x45xf32>, vector<45x30xf32>, vector<2x30xf32> -> vector<2x30xf32>
    %c0_84 = arith.constant 0 : index
    %c0_85 = arith.constant 0 : index
    %124 = vector.load %arg3[%c0_84, %c0_85] : memref<1x30xf32, #tpu.memory_space<vmem>>, vector<1x30xf32>
    %125 = vector.broadcast %124 : vector<1x30xf32> to vector<2x30xf32>
    %126 = arith.addf %123, %125 : vector<2x30xf32>
    %cst_86 = arith.constant 0.000000e+00 : f32
    %127 = vector.broadcast %cst_86 : f32 to vector<2x30xf32>
    %128 = arith.cmpf ogt, %126, %127 : vector<2x30xf32>
    %cst_87 = arith.constant 0.000000e+00 : f32
    %129 = vector.broadcast %cst_87 : f32 to vector<2x30xf32>
    %130 = arith.minimumf %126, %129 : vector<2x30xf32>
    %131 = math.exp %130 : vector<2x30xf32>
    %cst_88 = arith.constant 1.000000e+00 : f32
    %132 = vector.broadcast %cst_88 : f32 to vector<2x30xf32>
    %133 = arith.subf %131, %132 : vector<2x30xf32>
    %134 = arith.select %128, %126, %133 : vector<2x30xi1>, vector<2x30xf32>
    %c9 = arith.constant 9 : index
    %c0_89 = arith.constant 0 : index
    %c0_90 = arith.constant 0 : index
    %135 = vector.load %arg1[%c9, %c0_89, %c0_90] : memref<10x2x45xf32, #tpu.memory_space<vmem>>, vector<1x2x45xf32>
    %136 = vector.shape_cast %135 : vector<1x2x45xf32> to vector<2x45xf32>
    %c0_91 = arith.constant 0 : index
    %c0_92 = arith.constant 0 : index
    %137 = vector.load %arg2[%c0_91, %c0_92] : memref<45x30xf32, #tpu.memory_space<vmem>>, vector<45x30xf32>
    %cst_93 = arith.constant dense<0.000000e+00> : vector<2x30xf32>
    %138 = tpu.matmul %136, %137, %cst_93 {dimension_numbers = #tpu.dot_dimension_numbers<[1], [0], [0], [1], [0, 0, 1, 1], [], []>} : vector<2x45xf32>, vector<45x30xf32>, vector<2x30xf32> -> vector<2x30xf32>
    %c0_94 = arith.constant 0 : index
    %c0_95 = arith.constant 0 : index
    %139 = vector.load %arg3[%c0_94, %c0_95] : memref<1x30xf32, #tpu.memory_space<vmem>>, vector<1x30xf32>
    %140 = vector.broadcast %139 : vector<1x30xf32> to vector<2x30xf32>
    %141 = arith.addf %138, %140 : vector<2x30xf32>
    %cst_96 = arith.constant 0.000000e+00 : f32
    %142 = vector.broadcast %cst_96 : f32 to vector<2x30xf32>
    %143 = arith.cmpf ogt, %141, %142 : vector<2x30xf32>
    %cst_97 = arith.constant 0.000000e+00 : f32
    %144 = vector.broadcast %cst_97 : f32 to vector<2x30xf32>
    %145 = arith.minimumf %141, %144 : vector<2x30xf32>
    %146 = math.exp %145 : vector<2x30xf32>
    %cst_98 = arith.constant 1.000000e+00 : f32
    %147 = vector.broadcast %cst_98 : f32 to vector<2x30xf32>
    %148 = arith.subf %146, %147 : vector<2x30xf32>
    %149 = arith.select %143, %141, %148 : vector<2x30xi1>, vector<2x30xf32>
    %c0_99 = arith.constant 0 : index
    %c0_100 = arith.constant 0 : index
    %150 = vector.load %arg5[%c0_99, %c0_100] : memref<1x20xf32, #tpu.memory_space<vmem>>, vector<1x20xf32>
    %c0_101 = arith.constant 0 : index
    %c0_102 = arith.constant 0 : index
    %c0_103 = arith.constant 0 : index
    %151 = vector.load %arg4[%c0_101, %c0_102, %c0_103] : memref<4x30x20xf32, #tpu.memory_space<vmem>>, vector<1x30x20xf32>
    %152 = vector.shape_cast %151 : vector<1x30x20xf32> to vector<30x20xf32>
    %cst_104 = arith.constant dense<0.000000e+00> : vector<2x20xf32>
    %153 = tpu.matmul %14, %152, %cst_104 {dimension_numbers = #tpu.dot_dimension_numbers<[1], [0], [0], [1], [0, 0, 1, 1], [], []>} : vector<2x30xf32>, vector<30x20xf32>, vector<2x20xf32> -> vector<2x20xf32>
    %154 = vector.broadcast %150 : vector<1x20xf32> to vector<2x20xf32>
    %155 = arith.addf %154, %153 : vector<2x20xf32>
    %c1_105 = arith.constant 1 : index
    %c0_106 = arith.constant 0 : index
    %c0_107 = arith.constant 0 : index
    %156 = vector.load %arg4[%c1_105, %c0_106, %c0_107] : memref<4x30x20xf32, #tpu.memory_space<vmem>>, vector<1x30x20xf32>
    %157 = vector.shape_cast %156 : vector<1x30x20xf32> to vector<30x20xf32>
    %cst_108 = arith.constant dense<0.000000e+00> : vector<2x20xf32>
    %158 = tpu.matmul %29, %157, %cst_108 {dimension_numbers = #tpu.dot_dimension_numbers<[1], [0], [0], [1], [0, 0, 1, 1], [], []>} : vector<2x30xf32>, vector<30x20xf32>, vector<2x20xf32> -> vector<2x20xf32>
    %159 = arith.addf %155, %158 : vector<2x20xf32>
    %c2_109 = arith.constant 2 : index
    %c0_110 = arith.constant 0 : index
    %c0_111 = arith.constant 0 : index
    %160 = vector.load %arg4[%c2_109, %c0_110, %c0_111] : memref<4x30x20xf32, #tpu.memory_space<vmem>>, vector<1x30x20xf32>
    %161 = vector.shape_cast %160 : vector<1x30x20xf32> to vector<30x20xf32>
    %cst_112 = arith.constant dense<0.000000e+00> : vector<2x20xf32>
    %162 = tpu.matmul %44, %161, %cst_112 {dimension_numbers = #tpu.dot_dimension_numbers<[1], [0], [0], [1], [0, 0, 1, 1], [], []>} : vector<2x30xf32>, vector<30x20xf32>, vector<2x20xf32> -> vector<2x20xf32>
    %163 = arith.addf %159, %162 : vector<2x20xf32>
    %c3_113 = arith.constant 3 : index
    %c0_114 = arith.constant 0 : index
    %c0_115 = arith.constant 0 : index
    %164 = vector.load %arg4[%c3_113, %c0_114, %c0_115] : memref<4x30x20xf32, #tpu.memory_space<vmem>>, vector<1x30x20xf32>
    %165 = vector.shape_cast %164 : vector<1x30x20xf32> to vector<30x20xf32>
    %cst_116 = arith.constant dense<0.000000e+00> : vector<2x20xf32>
    %166 = tpu.matmul %59, %165, %cst_116 {dimension_numbers = #tpu.dot_dimension_numbers<[1], [0], [0], [1], [0, 0, 1, 1], [], []>} : vector<2x30xf32>, vector<30x20xf32>, vector<2x20xf32> -> vector<2x20xf32>
    %167 = arith.addf %163, %166 : vector<2x20xf32>
    %cst_117 = arith.constant 0.000000e+00 : f32
    %168 = vector.broadcast %cst_117 : f32 to vector<2x20xf32>
    %169 = arith.cmpf ogt, %167, %168 : vector<2x20xf32>
    %cst_118 = arith.constant 0.000000e+00 : f32
    %170 = vector.broadcast %cst_118 : f32 to vector<2x20xf32>
    %171 = arith.minimumf %167, %170 : vector<2x20xf32>
    %172 = math.exp %171 : vector<2x20xf32>
    %cst_119 = arith.constant 1.000000e+00 : f32
    %173 = vector.broadcast %cst_119 : f32 to vector<2x20xf32>
    %174 = arith.subf %172, %173 : vector<2x20xf32>
    %175 = arith.select %169, %167, %174 : vector<2x20xi1>, vector<2x20xf32>
    %c0_120 = arith.constant 0 : index
    %c0_121 = arith.constant 0 : index
    %176 = vector.load %arg5[%c0_120, %c0_121] : memref<1x20xf32, #tpu.memory_space<vmem>>, vector<1x20xf32>
    %c0_122 = arith.constant 0 : index
    %c0_123 = arith.constant 0 : index
    %c0_124 = arith.constant 0 : index
    %177 = vector.load %arg4[%c0_122, %c0_123, %c0_124] : memref<4x30x20xf32, #tpu.memory_space<vmem>>, vector<1x30x20xf32>
    %178 = vector.shape_cast %177 : vector<1x30x20xf32> to vector<30x20xf32>
    %cst_125 = arith.constant dense<0.000000e+00> : vector<2x20xf32>
    %179 = tpu.matmul %44, %178, %cst_125 {dimension_numbers = #tpu.dot_dimension_numbers<[1], [0], [0], [1], [0, 0, 1, 1], [], []>} : vector<2x30xf32>, vector<30x20xf32>, vector<2x20xf32> -> vector<2x20xf32>
    %180 = vector.broadcast %176 : vector<1x20xf32> to vector<2x20xf32>
    %181 = arith.addf %180, %179 : vector<2x20xf32>
    %c1_126 = arith.constant 1 : index
    %c0_127 = arith.constant 0 : index
    %c0_128 = arith.constant 0 : index
    %182 = vector.load %arg4[%c1_126, %c0_127, %c0_128] : memref<4x30x20xf32, #tpu.memory_space<vmem>>, vector<1x30x20xf32>
    %183 = vector.shape_cast %182 : vector<1x30x20xf32> to vector<30x20xf32>
    %cst_129 = arith.constant dense<0.000000e+00> : vector<2x20xf32>
    %184 = tpu.matmul %59, %183, %cst_129 {dimension_numbers = #tpu.dot_dimension_numbers<[1], [0], [0], [1], [0, 0, 1, 1], [], []>} : vector<2x30xf32>, vector<30x20xf32>, vector<2x20xf32> -> vector<2x20xf32>
    %185 = arith.addf %181, %184 : vector<2x20xf32>
    %c2_130 = arith.constant 2 : index
    %c0_131 = arith.constant 0 : index
    %c0_132 = arith.constant 0 : index
    %186 = vector.load %arg4[%c2_130, %c0_131, %c0_132] : memref<4x30x20xf32, #tpu.memory_space<vmem>>, vector<1x30x20xf32>
    %187 = vector.shape_cast %186 : vector<1x30x20xf32> to vector<30x20xf32>
    %cst_133 = arith.constant dense<0.000000e+00> : vector<2x20xf32>
    %188 = tpu.matmul %74, %187, %cst_133 {dimension_numbers = #tpu.dot_dimension_numbers<[1], [0], [0], [1], [0, 0, 1, 1], [], []>} : vector<2x30xf32>, vector<30x20xf32>, vector<2x20xf32> -> vector<2x20xf32>
    %189 = arith.addf %185, %188 : vector<2x20xf32>
    %c3_134 = arith.constant 3 : index
    %c0_135 = arith.constant 0 : index
    %c0_136 = arith.constant 0 : index
    %190 = vector.load %arg4[%c3_134, %c0_135, %c0_136] : memref<4x30x20xf32, #tpu.memory_space<vmem>>, vector<1x30x20xf32>
    %191 = vector.shape_cast %190 : vector<1x30x20xf32> to vector<30x20xf32>
    %cst_137 = arith.constant dense<0.000000e+00> : vector<2x20xf32>
    %192 = tpu.matmul %89, %191, %cst_137 {dimension_numbers = #tpu.dot_dimension_numbers<[1], [0], [0], [1], [0, 0, 1, 1], [], []>} : vector<2x30xf32>, vector<30x20xf32>, vector<2x20xf32> -> vector<2x20xf32>
    %193 = arith.addf %189, %192 : vector<2x20xf32>
    %cst_138 = arith.constant 0.000000e+00 : f32
    %194 = vector.broadcast %cst_138 : f32 to vector<2x20xf32>
    %195 = arith.cmpf ogt, %193, %194 : vector<2x20xf32>
    %cst_139 = arith.constant 0.000000e+00 : f32
    %196 = vector.broadcast %cst_139 : f32 to vector<2x20xf32>
    %197 = arith.minimumf %193, %196 : vector<2x20xf32>
    %198 = math.exp %197 : vector<2x20xf32>
    %cst_140 = arith.constant 1.000000e+00 : f32
    %199 = vector.broadcast %cst_140 : f32 to vector<2x20xf32>
    %200 = arith.subf %198, %199 : vector<2x20xf32>
    %201 = arith.select %195, %193, %200 : vector<2x20xi1>, vector<2x20xf32>
    %c0_141 = arith.constant 0 : index
    %c0_142 = arith.constant 0 : index
    %202 = vector.load %arg5[%c0_141, %c0_142] : memref<1x20xf32, #tpu.memory_space<vmem>>, vector<1x20xf32>
    %c0_143 = arith.constant 0 : index
    %c0_144 = arith.constant 0 : index
    %c0_145 = arith.constant 0 : index
    %203 = vector.load %arg4[%c0_143, %c0_144, %c0_145] : memref<4x30x20xf32, #tpu.memory_space<vmem>>, vector<1x30x20xf32>
    %204 = vector.shape_cast %203 : vector<1x30x20xf32> to vector<30x20xf32>
    %cst_146 = arith.constant dense<0.000000e+00> : vector<2x20xf32>
    %205 = tpu.matmul %74, %204, %cst_146 {dimension_numbers = #tpu.dot_dimension_numbers<[1], [0], [0], [1], [0, 0, 1, 1], [], []>} : vector<2x30xf32>, vector<30x20xf32>, vector<2x20xf32> -> vector<2x20xf32>
    %206 = vector.broadcast %202 : vector<1x20xf32> to vector<2x20xf32>
    %207 = arith.addf %206, %205 : vector<2x20xf32>
    %c1_147 = arith.constant 1 : index
    %c0_148 = arith.constant 0 : index
    %c0_149 = arith.constant 0 : index
    %208 = vector.load %arg4[%c1_147, %c0_148, %c0_149] : memref<4x30x20xf32, #tpu.memory_space<vmem>>, vector<1x30x20xf32>
    %209 = vector.shape_cast %208 : vector<1x30x20xf32> to vector<30x20xf32>
    %cst_150 = arith.constant dense<0.000000e+00> : vector<2x20xf32>
    %210 = tpu.matmul %89, %209, %cst_150 {dimension_numbers = #tpu.dot_dimension_numbers<[1], [0], [0], [1], [0, 0, 1, 1], [], []>} : vector<2x30xf32>, vector<30x20xf32>, vector<2x20xf32> -> vector<2x20xf32>
    %211 = arith.addf %207, %210 : vector<2x20xf32>
    %c2_151 = arith.constant 2 : index
    %c0_152 = arith.constant 0 : index
    %c0_153 = arith.constant 0 : index
    %212 = vector.load %arg4[%c2_151, %c0_152, %c0_153] : memref<4x30x20xf32, #tpu.memory_space<vmem>>, vector<1x30x20xf32>
    %213 = vector.shape_cast %212 : vector<1x30x20xf32> to vector<30x20xf32>
    %cst_154 = arith.constant dense<0.000000e+00> : vector<2x20xf32>
    %214 = tpu.matmul %104, %213, %cst_154 {dimension_numbers = #tpu.dot_dimension_numbers<[1], [0], [0], [1], [0, 0, 1, 1], [], []>} : vector<2x30xf32>, vector<30x20xf32>, vector<2x20xf32> -> vector<2x20xf32>
    %215 = arith.addf %211, %214 : vector<2x20xf32>
    %c3_155 = arith.constant 3 : index
    %c0_156 = arith.constant 0 : index
    %c0_157 = arith.constant 0 : index
    %216 = vector.load %arg4[%c3_155, %c0_156, %c0_157] : memref<4x30x20xf32, #tpu.memory_space<vmem>>, vector<1x30x20xf32>
    %217 = vector.shape_cast %216 : vector<1x30x20xf32> to vector<30x20xf32>
    %cst_158 = arith.constant dense<0.000000e+00> : vector<2x20xf32>
    %218 = tpu.matmul %119, %217, %cst_158 {dimension_numbers = #tpu.dot_dimension_numbers<[1], [0], [0], [1], [0, 0, 1, 1], [], []>} : vector<2x30xf32>, vector<30x20xf32>, vector<2x20xf32> -> vector<2x20xf32>
    %219 = arith.addf %215, %218 : vector<2x20xf32>
    %cst_159 = arith.constant 0.000000e+00 : f32
    %220 = vector.broadcast %cst_159 : f32 to vector<2x20xf32>
    %221 = arith.cmpf ogt, %219, %220 : vector<2x20xf32>
    %cst_160 = arith.constant 0.000000e+00 : f32
    %222 = vector.broadcast %cst_160 : f32 to vector<2x20xf32>
    %223 = arith.minimumf %219, %222 : vector<2x20xf32>
    %224 = math.exp %223 : vector<2x20xf32>
    %cst_161 = arith.constant 1.000000e+00 : f32
    %225 = vector.broadcast %cst_161 : f32 to vector<2x20xf32>
    %226 = arith.subf %224, %225 : vector<2x20xf32>
    %227 = arith.select %221, %219, %226 : vector<2x20xi1>, vector<2x20xf32>
    %c0_162 = arith.constant 0 : index
    %c0_163 = arith.constant 0 : index
    %228 = vector.load %arg5[%c0_162, %c0_163] : memref<1x20xf32, #tpu.memory_space<vmem>>, vector<1x20xf32>
    %c0_164 = arith.constant 0 : index
    %c0_165 = arith.constant 0 : index
    %c0_166 = arith.constant 0 : index
    %229 = vector.load %arg4[%c0_164, %c0_165, %c0_166] : memref<4x30x20xf32, #tpu.memory_space<vmem>>, vector<1x30x20xf32>
    %230 = vector.shape_cast %229 : vector<1x30x20xf32> to vector<30x20xf32>
    %cst_167 = arith.constant dense<0.000000e+00> : vector<2x20xf32>
    %231 = tpu.matmul %104, %230, %cst_167 {dimension_numbers = #tpu.dot_dimension_numbers<[1], [0], [0], [1], [0, 0, 1, 1], [], []>} : vector<2x30xf32>, vector<30x20xf32>, vector<2x20xf32> -> vector<2x20xf32>
    %232 = vector.broadcast %228 : vector<1x20xf32> to vector<2x20xf32>
    %233 = arith.addf %232, %231 : vector<2x20xf32>
    %c1_168 = arith.constant 1 : index
    %c0_169 = arith.constant 0 : index
    %c0_170 = arith.constant 0 : index
    %234 = vector.load %arg4[%c1_168, %c0_169, %c0_170] : memref<4x30x20xf32, #tpu.memory_space<vmem>>, vector<1x30x20xf32>
    %235 = vector.shape_cast %234 : vector<1x30x20xf32> to vector<30x20xf32>
    %cst_171 = arith.constant dense<0.000000e+00> : vector<2x20xf32>
    %236 = tpu.matmul %119, %235, %cst_171 {dimension_numbers = #tpu.dot_dimension_numbers<[1], [0], [0], [1], [0, 0, 1, 1], [], []>} : vector<2x30xf32>, vector<30x20xf32>, vector<2x20xf32> -> vector<2x20xf32>
    %237 = arith.addf %233, %236 : vector<2x20xf32>
    %c2_172 = arith.constant 2 : index
    %c0_173 = arith.constant 0 : index
    %c0_174 = arith.constant 0 : index
    %238 = vector.load %arg4[%c2_172, %c0_173, %c0_174] : memref<4x30x20xf32, #tpu.memory_space<vmem>>, vector<1x30x20xf32>
    %239 = vector.shape_cast %238 : vector<1x30x20xf32> to vector<30x20xf32>
    %cst_175 = arith.constant dense<0.000000e+00> : vector<2x20xf32>
    %240 = tpu.matmul %134, %239, %cst_175 {dimension_numbers = #tpu.dot_dimension_numbers<[1], [0], [0], [1], [0, 0, 1, 1], [], []>} : vector<2x30xf32>, vector<30x20xf32>, vector<2x20xf32> -> vector<2x20xf32>
    %241 = arith.addf %237, %240 : vector<2x20xf32>
    %c3_176 = arith.constant 3 : index
    %c0_177 = arith.constant 0 : index
    %c0_178 = arith.constant 0 : index
    %242 = vector.load %arg4[%c3_176, %c0_177, %c0_178] : memref<4x30x20xf32, #tpu.memory_space<vmem>>, vector<1x30x20xf32>
    %243 = vector.shape_cast %242 : vector<1x30x20xf32> to vector<30x20xf32>
    %cst_179 = arith.constant dense<0.000000e+00> : vector<2x20xf32>
    %244 = tpu.matmul %149, %243, %cst_179 {dimension_numbers = #tpu.dot_dimension_numbers<[1], [0], [0], [1], [0, 0, 1, 1], [], []>} : vector<2x30xf32>, vector<30x20xf32>, vector<2x20xf32> -> vector<2x20xf32>
    %245 = arith.addf %241, %244 : vector<2x20xf32>
    %cst_180 = arith.constant 0.000000e+00 : f32
    %246 = vector.broadcast %cst_180 : f32 to vector<2x20xf32>
    %247 = arith.cmpf ogt, %245, %246 : vector<2x20xf32>
    %cst_181 = arith.constant 0.000000e+00 : f32
    %248 = vector.broadcast %cst_181 : f32 to vector<2x20xf32>
    %249 = arith.minimumf %245, %248 : vector<2x20xf32>
    %250 = math.exp %249 : vector<2x20xf32>
    %cst_182 = arith.constant 1.000000e+00 : f32
    %251 = vector.broadcast %cst_182 : f32 to vector<2x20xf32>
    %252 = arith.subf %250, %251 : vector<2x20xf32>
    %253 = arith.select %247, %245, %252 : vector<2x20xi1>, vector<2x20xf32>
    %c0_183 = arith.constant 0 : index
    %c0_184 = arith.constant 0 : index
    %254 = vector.load %arg7[%c0_183, %c0_184] : memref<1x10xf32, #tpu.memory_space<vmem>>, vector<1x10xf32>
    %c0_185 = arith.constant 0 : index
    %c0_186 = arith.constant 0 : index
    %c0_187 = arith.constant 0 : index
    %255 = vector.load %arg6[%c0_185, %c0_186, %c0_187] : memref<2x20x10xf32, #tpu.memory_space<vmem>>, vector<1x20x10xf32>
    %256 = vector.shape_cast %255 : vector<1x20x10xf32> to vector<20x10xf32>
    %cst_188 = arith.constant dense<0.000000e+00> : vector<2x10xf32>
    %257 = tpu.matmul %175, %256, %cst_188 {dimension_numbers = #tpu.dot_dimension_numbers<[1], [0], [0], [1], [0, 0, 1, 1], [], []>} : vector<2x20xf32>, vector<20x10xf32>, vector<2x10xf32> -> vector<2x10xf32>
    %258 = vector.broadcast %254 : vector<1x10xf32> to vector<2x10xf32>
    %259 = arith.addf %258, %257 : vector<2x10xf32>
    %c1_189 = arith.constant 1 : index
    %c0_190 = arith.constant 0 : index
    %c0_191 = arith.constant 0 : index
    %260 = vector.load %arg6[%c1_189, %c0_190, %c0_191] : memref<2x20x10xf32, #tpu.memory_space<vmem>>, vector<1x20x10xf32>
    %261 = vector.shape_cast %260 : vector<1x20x10xf32> to vector<20x10xf32>
    %cst_192 = arith.constant dense<0.000000e+00> : vector<2x10xf32>
    %262 = tpu.matmul %201, %261, %cst_192 {dimension_numbers = #tpu.dot_dimension_numbers<[1], [0], [0], [1], [0, 0, 1, 1], [], []>} : vector<2x20xf32>, vector<20x10xf32>, vector<2x10xf32> -> vector<2x10xf32>
    %263 = arith.addf %259, %262 : vector<2x10xf32>
    %cst_193 = arith.constant 0.000000e+00 : f32
    %264 = vector.broadcast %cst_193 : f32 to vector<2x10xf32>
    %265 = arith.cmpf ogt, %263, %264 : vector<2x10xf32>
    %cst_194 = arith.constant 0.000000e+00 : f32
    %266 = vector.broadcast %cst_194 : f32 to vector<2x10xf32>
    %267 = arith.minimumf %263, %266 : vector<2x10xf32>
    %268 = math.exp %267 : vector<2x10xf32>
    %cst_195 = arith.constant 1.000000e+00 : f32
    %269 = vector.broadcast %cst_195 : f32 to vector<2x10xf32>
    %270 = arith.subf %268, %269 : vector<2x10xf32>
    %271 = arith.select %265, %263, %270 : vector<2x10xi1>, vector<2x10xf32>
    %c0_196 = arith.constant 0 : index
    %c0_197 = arith.constant 0 : index
    %272 = vector.load %arg7[%c0_196, %c0_197] : memref<1x10xf32, #tpu.memory_space<vmem>>, vector<1x10xf32>
    %c0_198 = arith.constant 0 : index
    %c0_199 = arith.constant 0 : index
    %c0_200 = arith.constant 0 : index
    %273 = vector.load %arg6[%c0_198, %c0_199, %c0_200] : memref<2x20x10xf32, #tpu.memory_space<vmem>>, vector<1x20x10xf32>
    %274 = vector.shape_cast %273 : vector<1x20x10xf32> to vector<20x10xf32>
    %cst_201 = arith.constant dense<0.000000e+00> : vector<2x10xf32>
    %275 = tpu.matmul %201, %274, %cst_201 {dimension_numbers = #tpu.dot_dimension_numbers<[1], [0], [0], [1], [0, 0, 1, 1], [], []>} : vector<2x20xf32>, vector<20x10xf32>, vector<2x10xf32> -> vector<2x10xf32>
    %276 = vector.broadcast %272 : vector<1x10xf32> to vector<2x10xf32>
    %277 = arith.addf %276, %275 : vector<2x10xf32>
    %c1_202 = arith.constant 1 : index
    %c0_203 = arith.constant 0 : index
    %c0_204 = arith.constant 0 : index
    %278 = vector.load %arg6[%c1_202, %c0_203, %c0_204] : memref<2x20x10xf32, #tpu.memory_space<vmem>>, vector<1x20x10xf32>
    %279 = vector.shape_cast %278 : vector<1x20x10xf32> to vector<20x10xf32>
    %cst_205 = arith.constant dense<0.000000e+00> : vector<2x10xf32>
    %280 = tpu.matmul %227, %279, %cst_205 {dimension_numbers = #tpu.dot_dimension_numbers<[1], [0], [0], [1], [0, 0, 1, 1], [], []>} : vector<2x20xf32>, vector<20x10xf32>, vector<2x10xf32> -> vector<2x10xf32>
    %281 = arith.addf %277, %280 : vector<2x10xf32>
    %cst_206 = arith.constant 0.000000e+00 : f32
    %282 = vector.broadcast %cst_206 : f32 to vector<2x10xf32>
    %283 = arith.cmpf ogt, %281, %282 : vector<2x10xf32>
    %cst_207 = arith.constant 0.000000e+00 : f32
    %284 = vector.broadcast %cst_207 : f32 to vector<2x10xf32>
    %285 = arith.minimumf %281, %284 : vector<2x10xf32>
    %286 = math.exp %285 : vector<2x10xf32>
    %cst_208 = arith.constant 1.000000e+00 : f32
    %287 = vector.broadcast %cst_208 : f32 to vector<2x10xf32>
    %288 = arith.subf %286, %287 : vector<2x10xf32>
    %289 = arith.select %283, %281, %288 : vector<2x10xi1>, vector<2x10xf32>
    %c0_209 = arith.constant 0 : index
    %c0_210 = arith.constant 0 : index
    %290 = vector.load %arg7[%c0_209, %c0_210] : memref<1x10xf32, #tpu.memory_space<vmem>>, vector<1x10xf32>
    %c0_211 = arith.constant 0 : index
    %c0_212 = arith.constant 0 : index
    %c0_213 = arith.constant 0 : index
    %291 = vector.load %arg6[%c0_211, %c0_212, %c0_213] : memref<2x20x10xf32, #tpu.memory_space<vmem>>, vector<1x20x10xf32>
    %292 = vector.shape_cast %291 : vector<1x20x10xf32> to vector<20x10xf32>
    %cst_214 = arith.constant dense<0.000000e+00> : vector<2x10xf32>
    %293 = tpu.matmul %227, %292, %cst_214 {dimension_numbers = #tpu.dot_dimension_numbers<[1], [0], [0], [1], [0, 0, 1, 1], [], []>} : vector<2x20xf32>, vector<20x10xf32>, vector<2x10xf32> -> vector<2x10xf32>
    %294 = vector.broadcast %290 : vector<1x10xf32> to vector<2x10xf32>
    %295 = arith.addf %294, %293 : vector<2x10xf32>
    %c1_215 = arith.constant 1 : index
    %c0_216 = arith.constant 0 : index
    %c0_217 = arith.constant 0 : index
    %296 = vector.load %arg6[%c1_215, %c0_216, %c0_217] : memref<2x20x10xf32, #tpu.memory_space<vmem>>, vector<1x20x10xf32>
    %297 = vector.shape_cast %296 : vector<1x20x10xf32> to vector<20x10xf32>
    %cst_218 = arith.constant dense<0.000000e+00> : vector<2x10xf32>
    %298 = tpu.matmul %253, %297, %cst_218 {dimension_numbers = #tpu.dot_dimension_numbers<[1], [0], [0], [1], [0, 0, 1, 1], [], []>} : vector<2x20xf32>, vector<20x10xf32>, vector<2x10xf32> -> vector<2x10xf32>
    %299 = arith.addf %295, %298 : vector<2x10xf32>
    %cst_219 = arith.constant 0.000000e+00 : f32
    %300 = vector.broadcast %cst_219 : f32 to vector<2x10xf32>
    %301 = arith.cmpf ogt, %299, %300 : vector<2x10xf32>
    %cst_220 = arith.constant 0.000000e+00 : f32
    %302 = vector.broadcast %cst_220 : f32 to vector<2x10xf32>
    %303 = arith.minimumf %299, %302 : vector<2x10xf32>
    %304 = math.exp %303 : vector<2x10xf32>
    %cst_221 = arith.constant 1.000000e+00 : f32
    %305 = vector.broadcast %cst_221 : f32 to vector<2x10xf32>
    %306 = arith.subf %304, %305 : vector<2x10xf32>
    %307 = arith.select %301, %299, %306 : vector<2x10xi1>, vector<2x10xf32>
    %c0_222 = arith.constant 0 : index
    %c0_223 = arith.constant 0 : index
    %308 = vector.load %arg9[%c0_222, %c0_223] : memref<1x20xf32, #tpu.memory_space<vmem>>, vector<1x20xf32>
    %c0_224 = arith.constant 0 : index
    %c0_225 = arith.constant 0 : index
    %c0_226 = arith.constant 0 : index
    %309 = vector.load %arg8[%c0_224, %c0_225, %c0_226] : memref<3x10x20xf32, #tpu.memory_space<vmem>>, vector<1x10x20xf32>
    %310 = vector.shape_cast %309 : vector<1x10x20xf32> to vector<10x20xf32>
    %cst_227 = arith.constant dense<0.000000e+00> : vector<2x20xf32>
    %311 = tpu.matmul %271, %310, %cst_227 {dimension_numbers = #tpu.dot_dimension_numbers<[1], [0], [0], [1], [0, 0, 1, 1], [], []>} : vector<2x10xf32>, vector<10x20xf32>, vector<2x20xf32> -> vector<2x20xf32>
    %312 = vector.broadcast %308 : vector<1x20xf32> to vector<2x20xf32>
    %313 = arith.addf %312, %311 : vector<2x20xf32>
    %c1_228 = arith.constant 1 : index
    %c0_229 = arith.constant 0 : index
    %c0_230 = arith.constant 0 : index
    %314 = vector.load %arg8[%c1_228, %c0_229, %c0_230] : memref<3x10x20xf32, #tpu.memory_space<vmem>>, vector<1x10x20xf32>
    %315 = vector.shape_cast %314 : vector<1x10x20xf32> to vector<10x20xf32>
    %cst_231 = arith.constant dense<0.000000e+00> : vector<2x20xf32>
    %316 = tpu.matmul %289, %315, %cst_231 {dimension_numbers = #tpu.dot_dimension_numbers<[1], [0], [0], [1], [0, 0, 1, 1], [], []>} : vector<2x10xf32>, vector<10x20xf32>, vector<2x20xf32> -> vector<2x20xf32>
    %317 = arith.addf %313, %316 : vector<2x20xf32>
    %c2_232 = arith.constant 2 : index
    %c0_233 = arith.constant 0 : index
    %c0_234 = arith.constant 0 : index
    %318 = vector.load %arg8[%c2_232, %c0_233, %c0_234] : memref<3x10x20xf32, #tpu.memory_space<vmem>>, vector<1x10x20xf32>
    %319 = vector.shape_cast %318 : vector<1x10x20xf32> to vector<10x20xf32>
    %cst_235 = arith.constant dense<0.000000e+00> : vector<2x20xf32>
    %320 = tpu.matmul %307, %319, %cst_235 {dimension_numbers = #tpu.dot_dimension_numbers<[1], [0], [0], [1], [0, 0, 1, 1], [], []>} : vector<2x10xf32>, vector<10x20xf32>, vector<2x20xf32> -> vector<2x20xf32>
    %321 = arith.addf %317, %320 : vector<2x20xf32>
    %cst_236 = arith.constant 0.000000e+00 : f32
    %322 = vector.broadcast %cst_236 : f32 to vector<2x20xf32>
    %323 = arith.cmpf ogt, %321, %322 : vector<2x20xf32>
    %cst_237 = arith.constant 0.000000e+00 : f32
    %324 = vector.broadcast %cst_237 : f32 to vector<2x20xf32>
    %325 = arith.minimumf %321, %324 : vector<2x20xf32>
    %326 = math.exp %325 : vector<2x20xf32>
    %cst_238 = arith.constant 1.000000e+00 : f32
    %327 = vector.broadcast %cst_238 : f32 to vector<2x20xf32>
    %328 = arith.subf %326, %327 : vector<2x20xf32>
    %329 = arith.select %323, %321, %328 : vector<2x20xi1>, vector<2x20xf32>
    %c0_239 = arith.constant 0 : index
    %c0_240 = arith.constant 0 : index
    %330 = vector.load %arg0[%c0_239, %c0_240] : memref<2x45xf32, #tpu.memory_space<vmem>>, vector<2x45xf32>
    %c0_241 = arith.constant 0 : index
    %c0_242 = arith.constant 0 : index
    %331 = vector.load %arg10[%c0_241, %c0_242] : memref<45x256xf32, #tpu.memory_space<vmem>>, vector<45x256xf32>
    %cst_243 = arith.constant dense<0.000000e+00> : vector<2x256xf32>
    %332 = tpu.matmul %330, %331, %cst_243 {dimension_numbers = #tpu.dot_dimension_numbers<[1], [0], [0], [1], [0, 0, 1, 1], [], []>} : vector<2x45xf32>, vector<45x256xf32>, vector<2x256xf32> -> vector<2x256xf32>
    %c0_244 = arith.constant 0 : index
    %c0_245 = arith.constant 0 : index
    %333 = vector.load %arg11[%c0_244, %c0_245] : memref<20x256xf32, #tpu.memory_space<vmem>>, vector<20x256xf32>
    %cst_246 = arith.constant dense<0.000000e+00> : vector<2x256xf32>
    %334 = tpu.matmul %329, %333, %cst_246 {dimension_numbers = #tpu.dot_dimension_numbers<[1], [0], [0], [1], [0, 0, 1, 1], [], []>} : vector<2x20xf32>, vector<20x256xf32>, vector<2x256xf32> -> vector<2x256xf32>
    %335 = arith.addf %332, %334 : vector<2x256xf32>
    %c0_247 = arith.constant 0 : index
    %c0_248 = arith.constant 0 : index
    %336 = vector.load %arg12[%c0_247, %c0_248] : memref<1x256xf32, #tpu.memory_space<vmem>>, vector<1x256xf32>
    %337 = vector.broadcast %336 : vector<1x256xf32> to vector<2x256xf32>
    %338 = arith.addf %335, %337 : vector<2x256xf32>
    %cst_249 = arith.constant 0.000000e+00 : f32
    %339 = vector.broadcast %cst_249 : f32 to vector<2x256xf32>
    %340 = arith.cmpf ogt, %338, %339 : vector<2x256xf32>
    %cst_250 = arith.constant 0.000000e+00 : f32
    %341 = vector.broadcast %cst_250 : f32 to vector<2x256xf32>
    %342 = arith.minimumf %338, %341 : vector<2x256xf32>
    %343 = math.exp %342 : vector<2x256xf32>
    %cst_251 = arith.constant 1.000000e+00 : f32
    %344 = vector.broadcast %cst_251 : f32 to vector<2x256xf32>
    %345 = arith.subf %343, %344 : vector<2x256xf32>
    %346 = arith.select %340, %338, %345 : vector<2x256xi1>, vector<2x256xf32>
    %c0_252 = arith.constant 0 : index
    %c0_253 = arith.constant 0 : index
    %347 = vector.load %arg13[%c0_252, %c0_253] : memref<256x256xf32, #tpu.memory_space<vmem>>, vector<256x256xf32>
    %cst_254 = arith.constant dense<0.000000e+00> : vector<2x256xf32>
    %348 = tpu.matmul %346, %347, %cst_254 {dimension_numbers = #tpu.dot_dimension_numbers<[1], [0], [0], [1], [0, 0, 1, 1], [], []>} : vector<2x256xf32>, vector<256x256xf32>, vector<2x256xf32> -> vector<2x256xf32>
    %c0_255 = arith.constant 0 : index
    %c0_256 = arith.constant 0 : index
    %349 = vector.load %arg14[%c0_255, %c0_256] : memref<1x256xf32, #tpu.memory_space<vmem>>, vector<1x256xf32>
    %350 = vector.broadcast %349 : vector<1x256xf32> to vector<2x256xf32>
    %351 = arith.addf %348, %350 : vector<2x256xf32>
    %cst_257 = arith.constant 0.000000e+00 : f32
    %352 = vector.broadcast %cst_257 : f32 to vector<2x256xf32>
    %353 = arith.cmpf ogt, %351, %352 : vector<2x256xf32>
    %cst_258 = arith.constant 0.000000e+00 : f32
    %354 = vector.broadcast %cst_258 : f32 to vector<2x256xf32>
    %355 = arith.minimumf %351, %354 : vector<2x256xf32>
    %356 = math.exp %355 : vector<2x256xf32>
    %cst_259 = arith.constant 1.000000e+00 : f32
    %357 = vector.broadcast %cst_259 : f32 to vector<2x256xf32>
    %358 = arith.subf %356, %357 : vector<2x256xf32>
    %359 = arith.select %353, %351, %358 : vector<2x256xi1>, vector<2x256xf32>
    %c0_260 = arith.constant 0 : index
    %c0_261 = arith.constant 0 : index
    %360 = vector.load %arg15[%c0_260, %c0_261] : memref<256x256xf32, #tpu.memory_space<vmem>>, vector<256x256xf32>
    %cst_262 = arith.constant dense<0.000000e+00> : vector<2x256xf32>
    %361 = tpu.matmul %359, %360, %cst_262 {dimension_numbers = #tpu.dot_dimension_numbers<[1], [0], [0], [1], [0, 0, 1, 1], [], []>} : vector<2x256xf32>, vector<256x256xf32>, vector<2x256xf32> -> vector<2x256xf32>
    %c0_263 = arith.constant 0 : index
    %c0_264 = arith.constant 0 : index
    %362 = vector.load %arg16[%c0_263, %c0_264] : memref<1x256xf32, #tpu.memory_space<vmem>>, vector<1x256xf32>
    %363 = vector.broadcast %362 : vector<1x256xf32> to vector<2x256xf32>
    %364 = arith.addf %361, %363 : vector<2x256xf32>
    %cst_265 = arith.constant 0.000000e+00 : f32
    %365 = vector.broadcast %cst_265 : f32 to vector<2x256xf32>
    %366 = arith.cmpf ogt, %364, %365 : vector<2x256xf32>
    %cst_266 = arith.constant 0.000000e+00 : f32
    %367 = vector.broadcast %cst_266 : f32 to vector<2x256xf32>
    %368 = arith.minimumf %364, %367 : vector<2x256xf32>
    %369 = math.exp %368 : vector<2x256xf32>
    %cst_267 = arith.constant 1.000000e+00 : f32
    %370 = vector.broadcast %cst_267 : f32 to vector<2x256xf32>
    %371 = arith.subf %369, %370 : vector<2x256xf32>
    %372 = arith.select %366, %364, %371 : vector<2x256xi1>, vector<2x256xf32>
    %c0_268 = arith.constant 0 : index
    %c0_269 = arith.constant 0 : index
    %373 = vector.load %arg17[%c0_268, %c0_269] : memref<256x12xf32, #tpu.memory_space<vmem>>, vector<256x12xf32>
    %cst_270 = arith.constant dense<0.000000e+00> : vector<2x12xf32>
    %374 = tpu.matmul %372, %373, %cst_270 {dimension_numbers = #tpu.dot_dimension_numbers<[1], [0], [0], [1], [0, 0, 1, 1], [], []>} : vector<2x256xf32>, vector<256x12xf32>, vector<2x12xf32> -> vector<2x12xf32>
    %c0_271 = arith.constant 0 : index
    %c0_272 = arith.constant 0 : index
    %375 = vector.load %arg18[%c0_271, %c0_272] : memref<1x12xf32, #tpu.memory_space<vmem>>, vector<1x12xf32>
    %376 = vector.broadcast %375 : vector<1x12xf32> to vector<2x12xf32>
    %377 = arith.addf %374, %376 : vector<2x12xf32>
    %c0_273 = arith.constant 0 : index
    %c0_274 = arith.constant 0 : index
    %378 = vector.load %arg19[%c0_273, %c0_274] : memref<2x12xf32, #tpu.memory_space<vmem>>, vector<2x12xf32>
    tpu.vector_store %arg19[%c0_273, %c0_274], %377 {strides = array<i32>} : memref<2x12xf32, #tpu.memory_space<vmem>>, vector<2x12xf32>,
    return
  }
}

</mosaic_0001>

<bundles_post_ra>
// kernel: cnn_actor_forward.1
= control target key start
LH: loop header
LB: loop body
LE: loop exit
PB: predicated region body
PF: predicated region fallthrough
CT: control target
= control target key end

     0   :  { %s6162_s0 = inlined_call_operand.vmem [shape: f32[2,45], index: 0, kind: input, shape index: {}]   ;;  %s6163_s1 = inlined_call_operand.vmem [shape: f32[10,2,45], index: 1, kind: input, shape index: {}]   ;;  %s6164_s2 = inlined_call_operand.vmem [shape: f32[45,30], index: 2, kind: input, shape index: {}]   ;;  %s6165_s3 = inlined_call_operand.vmem [shape: f32[1,30], index: 3, kind: input, shape index: {}]   ;;  %s6166_s4 = inlined_call_operand.vmem [shape: f32[4,30,20], index: 4, kind: input, shape index: {}]   ;;  %s6167_s5 = inlined_call_operand.hbm [shape: f32[1,20], index: 5, kind: input, shape index: {}]   ;;  %s6168_s6 = inlined_call_operand.vmem [shape: f32[2,20,10], index: 6, kind: input, shape index: {}]   ;;  %s6169_s7 = inlined_call_operand.hbm [shape: f32[1,10], index: 7, kind: input, shape index: {}]   ;;  %s6170_s8 = inlined_call_operand.vmem [shape: f32[3,10,20], index: 8, kind: input, shape index: {}]   ;;  %s6171_s9 = inlined_call_operand.vmem [shape: f32[1,20], index: 9, kind: input, shape index: {}]   ;;  %s6172_s10 = inlined_call_operand.vmem [shape: f32[45,256], index: 10, kind: input, shape index: {}]   ;;  %s6173_s11 = inlined_call_operand.vmem [shape: f32[20,256], index: 11, kind: input, shape index: {}]   ;;  %s6174_s12 = inlined_call_operand.hbm [shape: f32[1,256], index: 12, kind: input, shape index: {}]   ;;  %s6175_s13 = inlined_call_operand.vmem [shape: f32[256,256], index: 13, kind: input, shape index: {}]   ;;  %s6176_s14 = inlined_call_operand.hbm [shape: f32[1,256], index: 14, kind: input, shape index: {}]   ;;  %s6177_s15 = inlined_call_operand.hbm [shape: f32[256,256], index: 15, kind: input, shape index: {}]   ;;  %s6178_s16 = inlined_call_operand.hbm [shape: f32[1,256], index: 16, kind: input, shape index: {}]   ;;  %s6179_s17 = inlined_call_operand.vmem [shape: f32[256,12], index: 17, kind: input, shape index: {}]   ;;  %s6180_s18 = inlined_call_operand.hbm [shape: f32[1,12], index: 18, kind: input, shape index: {}]   ;;  %s6181_s19 = inlined_call_operand.hbm [shape: f32[2,12], index: 19, kind: output, shape index: {}]  }
   0x1   :  { %6184 = sst [smem:[#allocation20_spill]] %s6162_s0 }
   0x2   :  { %6185 = sst [smem:[#allocation21_spill]] %s6163_s1 }
   0x3   :  { %6186 = sst [smem:[#allocation22_spill]] %s6164_s2 }
   0x4   :  { %6187 = sst [smem:[#allocation23_spill]] %s6165_s3 }
   0x5   :  { %24 = vsyncpa [#allocation3], 0 }
   0x6   :  { %25 = vsyncpa [#allocation6], 0 }
   0x7   :  { %26 = vsyncpa [#allocation9], 0 }
   0x8   :  { %27 = vsyncpa [#allocation12], 0 }
   0x9   :  { %28 = vsyncpa [#allocation4], 0  ;;  %s5050_s0 = smov [#allocation5]   ;;  %s5051_s20 = smov [#allocation8]  }
   0xa   :  { %s57_s30 = sshll.u32 %s5050_s0, 4  ;;  %s87_s21 = sshll.u32 %s5051_s20, 4  ;;  %s58_s30 = int_to_ptr.vmem [resolvable:$true] %s57_s30  ;;  %s88_s21 = int_to_ptr.vmem [resolvable:$true] %s87_s21 }
   0xb   :  { %s4864_s2 = scalar_lea.hbm %s6169_s7, 16 }
   0xc   :  { %p4865_p0 = scmp.ne.s32.totalorder %s6169_s7, %s4864_s2  ;;  %p4868_p1 = scmp.lt.u32.totalorder %s4864_s2, %s6169_s7 }
   0xe   :  { %p4870_p2 = pnand %p4868_p1, %p4865_p0 }
  0x10   :  { %4873 = shalt.err (!%p4870_p2)
}
  0x11   :  { %s4874_s26 = scalar_lea.vmem %s58_s30, 16  ;;  %s4878_s27 = scalar_lea.vmem %s58_s30, 32 }
  0x12   :  { %p4875_p3 = scmp.ne.s32.totalorder %s58_s30, %s4874_s26  ;;  %p4879_p4 = scmp.lt.s32.totalorder %s58_s30, %s58_s30 }
  0x13   :  { %p4880_p5 = scmp.lt.s32.totalorder %s4878_s27, %s4874_s26 }
  0x15   :  { %p4881_p6 = por %p4880_p5, %p4879_p4 }
  0x17   :  { %p4882_p7 = pnand %p4881_p6, %p4875_p3 }
  0x19   :  { %4885 = shalt.err (!%p4882_p7)
}
  0x1a   :  { %60 = dma.hbm_to_vmem [thread:$0]  %s6169_s7, 16, %s58_s30, [#allocation6]  }
  0x1b   :  { %s4886_s1 = scalar_lea.hbm %s6176_s14, 32 }
  0x1c   :  { %p4887_p8 = scmp.ne.s32.totalorder %s6176_s14, %s4886_s1  ;;  %p4890_p9 = scmp.lt.u32.totalorder %s4886_s1, %s6176_s14 }
  0x1e   :  { %p4892_p10 = pnand %p4890_p9, %p4887_p8 }
  0x20   :  { %4895 = shalt.err (!%p4892_p10)
}
  0x21   :  { %s4896_s25 = scalar_lea.vmem %s88_s21, 32  ;;  %p4901_p12 = scmp.lt.s32.totalorder %s88_s21, %s88_s21 }
  0x22   :  { %p4897_p11 = scmp.ne.s32.totalorder %s88_s21, %s4896_s25  ;;  %p4902_p13 = scmp.lt.s32.totalorder %s4896_s25, %s4896_s25 }
  0x24   :  { %p4903_p0 = por %p4902_p13, %p4901_p12 }
  0x26   :  { %p4904_p1 = pnand %p4903_p0, %p4897_p11 }
  0x28   :  { %4907 = shalt.err (!%p4904_p1)
}
  0x29   :  { %90 = dma.hbm_to_vmem [thread:$0]  %s6176_s14, 32, %s88_s21, [#allocation9]  }
  0x2a   :  { %s5052_s3 = smov [#allocation11]   ;;  %s5053_s27 = smov [#allocation2]  }
  0x2b   :  { %s109_s26 = sshll.u32 %s5052_s3, 4  ;;  %s45_s28 = sshll.u32 %s5053_s27, 4  ;;  %s110_s26 = int_to_ptr.vmem [resolvable:$true] %s109_s26  ;;  %s46_s28 = int_to_ptr.vmem [resolvable:$true] %s45_s28 }
  0x2c   :  { %s4908_s20 = scalar_lea.hbm %s6178_s16, 32 }
  0x2d   :  { %p4909_p2 = scmp.ne.s32.totalorder %s6178_s16, %s4908_s20  ;;  %p4912_p3 = scmp.lt.u32.totalorder %s4908_s20, %s6178_s16 }
  0x2f   :  { %p4914_p4 = pnand %p4912_p3, %p4909_p2 }
  0x31   :  { %4917 = shalt.err (!%p4914_p4)
}
  0x32   :  { %s4918_s14 = scalar_lea.vmem %s110_s26, 32  ;;  %p4923_p6 = scmp.lt.s32.totalorder %s110_s26, %s110_s26 }
  0x33   :  { %p4919_p5 = scmp.ne.s32.totalorder %s110_s26, %s4918_s14  ;;  %p4924_p7 = scmp.lt.s32.totalorder %s4918_s14, %s4918_s14 }
  0x35   :  { %p4925_p8 = por %p4924_p7, %p4923_p6 }
  0x37   :  { %p4926_p9 = pnand %p4925_p8, %p4919_p5 }
  0x39   :  { %4929 = shalt.err (!%p4926_p9)
}
  0x3a   :  { %112 = dma.hbm_to_vmem [thread:$0]  %s6178_s16, 32, %s110_s26, [#allocation12]  }
  0x3b   :  { %s4930_s30 = scalar_lea.hbm %s6167_s5, 16 }
  0x3c   :  { %p4931_p10 = scmp.ne.s32.totalorder %s6167_s5, %s4930_s30  ;;  %p4934_p11 = scmp.lt.u32.totalorder %s4930_s30, %s6167_s5 }
  0x3e   :  { %p4936_p12 = pnand %p4934_p11, %p4931_p10 }
  0x40   :  { %4939 = shalt.err (!%p4936_p12)
}
  0x41   :  { %s4940_s20 = scalar_lea.vmem %s46_s28, 16  ;;  %s4944_s1 = scalar_lea.vmem %s46_s28, 32 }
  0x42   :  { %p4941_p13 = scmp.ne.s32.totalorder %s46_s28, %s4940_s20  ;;  %p4945_p0 = scmp.lt.s32.totalorder %s46_s28, %s46_s28 }
  0x43   :  { %p4946_p1 = scmp.lt.s32.totalorder %s4944_s1, %s4940_s20 }
  0x45   :  { %p4947_p2 = por %p4946_p1, %p4945_p0 }
  0x47   :  { %p4948_p3 = pnand %p4947_p2, %p4941_p13 }
  0x49   :  { %4951 = shalt.err (!%p4948_p3)
}
  0x4a   :  { %48 = dma.hbm_to_vmem [thread:$0]  %s6167_s5, 16, %s46_s28, [#allocation3]  }
  0x4b   :  { %s5054_s22 = smov [#allocation7]   ;;  %s5055_s23 = smov [#allocation10]  }
  0x4c   :  { %s75_s2 = sshll.u32 %s5054_s22, 4  ;;  %s96_s14 = sshll.u32 %s5055_s23, 4  ;;  %s76_s2 = int_to_ptr.vmem [resolvable:$true] %s75_s2  ;;  %s5212_s14 = int_to_ptr.vmem [resolvable:$true] %s96_s14 }
  0x4d   :  { %s4952_s25 = scalar_lea.hbm %s6174_s12, 32 }
  0x4e   :  { %p4953_p4 = scmp.ne.s32.totalorder %s6174_s12, %s4952_s25  ;;  %p4956_p5 = scmp.lt.u32.totalorder %s4952_s25, %s6174_s12 }
  0x50   :  { %p4958_p6 = pnand %p4956_p5, %p4953_p4 }
  0x52   :  { %4961 = shalt.err (!%p4958_p6)
}
  0x53   :  { %s4962_s5 = scalar_lea.vmem %s76_s2, 32  ;;  %p4967_p8 = scmp.lt.s32.totalorder %s76_s2, %s76_s2 }
  0x54   :  { %p4963_p7 = scmp.ne.s32.totalorder %s76_s2, %s4962_s5  ;;  %p4968_p9 = scmp.lt.s32.totalorder %s4962_s5, %s4962_s5 }
  0x56   :  { %p4969_p10 = por %p4968_p9, %p4967_p8 }
  0x58   :  { %p4970_p11 = pnand %p4969_p10, %p4963_p7 }
  0x5a   :  { %4973 = shalt.err (!%p4970_p11)
}
  0x5b   :  { %78 = dma.hbm_to_vmem [thread:$0]  %s6174_s12, 32, %s76_s2, [#allocation6]  }
  0x5c   :  { %s4974_s1 = scalar_lea.hbm %s6177_s15, 8192 }
  0x5d   :  { %p4975_p12 = scmp.ne.s32.totalorder %s6177_s15, %s4974_s1  ;;  %p4978_p13 = scmp.lt.u32.totalorder %s4974_s1, %s6177_s15 }
  0x5f   :  { %p4980_p0 = pnand %p4978_p13, %p4975_p12 }
  0x61   :  { %4983 = shalt.err (!%p4980_p0)
}
  0x62   :  { %s4984_s21 = scalar_lea.vmem %s5212_s14, 8192  ;;  %p4989_p2 = scmp.lt.s32.totalorder %s5212_s14, %s5212_s14 }
  0x63   :  { %p4985_p1 = scmp.ne.s32.totalorder %s5212_s14, %s4984_s21  ;;  %p4990_p3 = scmp.lt.s32.totalorder %s4984_s21, %s4984_s21 }
  0x65   :  { %p4991_p4 = por %p4990_p3, %p4989_p2 }
  0x67   :  { %p4992_p5 = pnand %p4991_p4, %p4985_p1 }
  0x69   :  { %4995 = shalt.err (!%p4992_p5)
}
  0x6a   :  { %s5056_s12 = smov 256   ;;  %s5057_s2 = smov 16  }
  0x6b   :  { %102 = dma.hbm_to_vmem [thread:$0]  %s6177_s15, 8192, %s5212_s14, [#allocation9], %s5056_s12, %s5056_s12, %s5057_s2  }
  0x6c   :  { %s5058_s7 = smov [#allocation13]   ;;  %s4996_s5 = scalar_lea.hbm %s6180_s18, 16 }
  0x6d   :  { %s121_s30 = sshll.u32 %s5058_s7, 4  ;;  %p4997_p6 = scmp.ne.s32.totalorder %s6180_s18, %s4996_s5  ;;  %s122_s30 = int_to_ptr.vmem [resolvable:$true] %s121_s30 }
  0x6e   :  { %p5000_p7 = scmp.lt.u32.totalorder %s4996_s5, %s6180_s18 }
  0x70   :  { %p5002_p8 = pnand %p5000_p7, %p4997_p6 }
  0x72   :  { %5005 = shalt.err (!%p5002_p8)
}
  0x73   :  { %s5006_s1 = scalar_lea.vmem %s122_s30, 16  ;;  %s5010_s15 = scalar_lea.vmem %s122_s30, 32 }
  0x74   :  { %p5007_p9 = scmp.ne.s32.totalorder %s122_s30, %s5006_s1  ;;  %p5011_p10 = scmp.lt.s32.totalorder %s122_s30, %s122_s30 }
  0x75   :  { %p5012_p11 = scmp.lt.s32.totalorder %s5010_s15, %s5006_s1 }
  0x77   :  { %p5013_p12 = por %p5012_p11, %p5011_p10 }
  0x79   :  { %p5014_p13 = pnand %p5013_p12, %p5007_p9 }
  0x7b   :  { %5017 = shalt.err (!%p5014_p13)
}
  0x7c   :  { %124 = dma.hbm_to_vmem [thread:$0]  %s6180_s18, 16, %s122_s30, [#allocation12]  }
  0x7d   :  { %5040 = dma.done.wait [#allocation3], 16  }
  0x7e   :  { %5041 = vsyncadd [#allocation3], 4294967280 }
  0x7f   :  { %5042 = dma.done.wait [#allocation6], 48  }
  0x80   :  { %5043 = vsyncadd [#allocation6], 4294967248 }
  0x81   :  { %5044 = dma.done.wait [#allocation9], 8224  }
  0x82   :  { %5045 = vsyncadd [#allocation9], 4294959072 }
  0x83   :  { %5046 = dma.done.wait [#allocation12], 48  }
  0x84   :  { %5047 = vsyncadd [#allocation12], 4294967248  ;;  %v5059_v0 = vmov 0.0|0.0   ;;  %vm5060_vm0 = vmmov 0   ;;  %v5061_v1 = vmov 0.0   ;;  %s6188_s22 = sld [smem:[#allocation22_spill]] }
  0x85   :  { %4339 = vmatprep.subr.bf16.mxu0 %v5059_v0  ;;  %4349 = vmatprep.subr.bf16.mxu1 %v5059_v0  ;;  %vm164_vm1 = vcmask 1044480   ;;  %vm5062_vm2 = vmmov 1   ;;  %s6191_s29 = sld [smem:[#allocation21_spill]]  ;;  %vm160_vm4 = vcmask 367616   ;;  %v974_v22 = vld [vmem:[%s6166_s4] sm:$0xff]  ;;  %v975_v23 = vld [vmem:[%s6166_s4 + $0x8] sm:$0xff] }
  0x86   :  { %3950 = vmatprep.mubr.msk.f32.mxu0 %vm5060_vm0, %v5061_v1  ;;  %3965 = vmatprep.mubr.msk.f32.mxu1 %vm5060_vm0, %v5061_v1  ;;  %vm5294_vm3 = vmpackc.low %vm164_vm1, %vm5062_vm2  ;;  %vm982_vm5 = vcmask 1045504   ;;  %v5436_v24 = vpack.c.bf16 %v975_v23, %v974_v22  ;;  %v976_v26 = vld [vmem:[%s6166_s4 + $0x10] sm:$0xff]  ;;  %v977_v27 = vld [vmem:[%s6166_s4 + $0x18] sm:$0x3f]  ;;  %s6194_s25 = sld [smem:[#allocation23_spill]]  ;;  %vm978_vm7 = vcmask 244736  }
  0x87   :  { %vm5440_vm6 = vmpackc.low %vm982_vm5, %vm5062_vm2  ;;  %v5451_v28 = vpack.c.bf16 %v977_v27, %v976_v26  ;;  %v3630_v29 = vld [vmem:[%s6166_s4 + $0x20] sm:$0xff]  ;;  %v3631_v30 = vld [vmem:[%s6166_s4 + $0x28] sm:$0xff]  ;;  %s6197_s15 = sld [smem:[#allocation20_spill]] }
  0x88   :  { %v5463_v31 = vpack.c.bf16 %v3631_v30, %v3630_v29  ;;  %v3632_v32 = vld [vmem:[%s6166_s4 + $0x30] sm:$0xff]  ;;  %v3633_v33 = vld [vmem:[%s6166_s4 + $0x38] sm:$0x3f]  ;;  %v3636_v60 = vld [vmem:[%s6166_s4 + $0x40] sm:$0xff] }
  0x89   :  { %v5473_v34 = vpack.c.bf16 %v3633_v33, %v3632_v32  ;;  %v3637_v61 = vld [vmem:[%s6166_s4 + $0x48] sm:$0xff]  ;;  %v3644_v27 = vld [vmem:[%s6166_s4 + $0x70] sm:$0xff]  ;;  %v3645_v29 = vld [vmem:[%s6166_s4 + $0x78] sm:$0x3f] }
  0x8a   :  { %v147_v2 = vld [vmem:[%s6188_s22] sm:$0xff]  ;;  %v148_v3 = vld [vmem:[%s6188_s22 + $0x8] sm:$0xff]  ;;  %v149_v4 = vld [vmem:[%s6188_s22 + $0x10] sm:$0xff] }
  0x8b   :  { %v5270_v5 = vpack.c.bf16 %v148_v3, %v147_v2  ;;  %v150_v6 = vld [vmem:[%s6188_s22 + $0x18] sm:$0xff]  ;;  %v151_v8 = vld [vmem:[%s6188_s22 + $0x20] sm:$0xff]  ;;  %v152_v9 = vld [vmem:[%s6188_s22 + $0x28] sm:$0x1f] }
  0x8c   :  { %v5277_v7 = vpack.c.bf16 %v150_v6, %v149_v4  ;;  %v5289_v10 = vpack.c.bf16 %v152_v9, %v151_v8  ;;  %v146_v12 = vld [vmem:[%s6191_s29] sm:$0x3]  ;;  %v3591_v13 = vld [vmem:[%s6191_s29 + $0x2] sm:$0x3]  ;;  %v3595_v14 = vld [vmem:[%s6191_s29 + $0x4] sm:$0x3] }
  0x8d   :  { %4341 = vmatpush3.bf16.msra.mxu0 %v5270_v5  ;;  %4351 = vmatpush3.bf16.msra.mxu1 %v5270_v5  ;;  %v3599_v15 = vld [vmem:[%s6191_s29 + $0x6] sm:$0x3]  ;;  %v3603_v16 = vld [vmem:[%s6191_s29 + $0x8] sm:$0x3]  ;;  %v3607_v17 = vld [vmem:[%s6191_s29 + $0xa] sm:$0x3] }
  0x8e   :  { %4342 = vmatprep.subr.bf16.mxu0 %v5059_v0  ;;  %4352 = vmatprep.subr.bf16.mxu1 %v5059_v0  ;;  %v3611_v18 = vld [vmem:[%s6191_s29 + $0xc] sm:$0x3]  ;;  %v3615_v19 = vld [vmem:[%s6191_s29 + $0xe] sm:$0x3]  ;;  %v3619_v20 = vld [vmem:[%s6191_s29 + $0x10] sm:$0x3] }
  0x8f   :  { %v3623_v21 = vld [vmem:[%s6191_s29 + $0x12] sm:$0x3]  ;;  %v5482_v35 = vld [vmem:[%s6194_s25] ss:$0 sm:$0xff]  ;;  %v3185_v11 = vld [vmem:[%s6175_s13 + $0x168] sm:$0xff] }
  0x90   :  { %v2204_v25 = vld [vmem:[%s6168_s6] sm:$0xff] }
  0x91   :  { %4344 = vmatpush3.bf16.msra.mxu0 %v5277_v7  ;;  %4354 = vmatpush3.bf16.msra.mxu1 %v5277_v7 }
  0x92   :  { %4345 = vmatprep.subr.bf16.mxu0 %v5059_v0  ;;  %4355 = vmatprep.subr.bf16.mxu1 %v5059_v0 }
  0x95   :  { %4348 = vmatpush3.bf16.msk.msra.mxu0 %vm5294_vm3, %v5289_v10  ;;  %4358 = vmatpush3.bf16.msk.msra.mxu1 %vm5294_vm3, %v5289_v10 }
  0x96   :  { %4359 = vmatprep.subr.bf16.mxu0 %v5059_v0  ;;  %4369 = vmatprep.subr.bf16.mxu1 %v5059_v0 }
  0x98   :  { %3951 = vmatmul.mubr.msk.f32.vlgmr.msra.gmra.mrb[0].mxu0 %vm160_vm4, %v146_v12  ;;  %3966 = vmatmul.mubr.msk.f32.vlgmr.msra.gmra.mrb[0].mxu1 %vm160_vm4, %v3591_v13  ;;  %v3639_v12 = vld [vmem:[%s6166_s4 + $0x58] sm:$0x3f] }
  0x99   :  { %4361 = vmatpush3.bf16.msra.mxu0 %v5270_v5  ;;  %4371 = vmatpush3.bf16.msra.mxu1 %v5270_v5 }
  0x9a   :  { %4362 = vmatprep.subr.bf16.mxu0 %v5059_v0  ;;  %4372 = vmatprep.subr.bf16.mxu1 %v5059_v0 }
  0x9b   :  { %3980 = vmatprep.mubr.msk.f32.mxu0 %vm5060_vm0, %v5061_v1  ;;  %3995 = vmatprep.mubr.msk.f32.mxu1 %vm5060_vm0, %v5061_v1 }
  0x9d   :  { %4364 = vmatpush3.bf16.msra.mxu0 %v5277_v7  ;;  %4374 = vmatpush3.bf16.msra.mxu1 %v5277_v7 }
  0x9e   :  { %4365 = vmatprep.subr.bf16.mxu0 %v5059_v0  ;;  %4375 = vmatprep.subr.bf16.mxu1 %v5059_v0 }
  0xa1   :  { %4368 = vmatpush3.bf16.msk.msra.mxu0 %vm5294_vm3, %v5289_v10  ;;  %4378 = vmatpush3.bf16.msk.msra.mxu1 %vm5294_vm3, %v5289_v10 }
  0xa2   :  { %4379 = vmatprep.subr.bf16.mxu0 %v5059_v0  ;;  %4389 = vmatprep.subr.bf16.mxu1 %v5059_v0 }
  0xa4   :  { %3981 = vmatmul.mubr.msk.f32.vlgmr.msra.gmra.mrb[2].mxu0 %vm160_vm4, %v3595_v14  ;;  %3996 = vmatmul.mubr.msk.f32.vlgmr.msra.gmra.mrb[2].mxu1 %vm160_vm4, %v3599_v15 }
  0xa5   :  { %4381 = vmatpush3.bf16.msra.mxu0 %v5270_v5  ;;  %4391 = vmatpush3.bf16.msra.mxu1 %v5270_v5 }
  0xa6   :  { %4382 = vmatprep.subr.bf16.mxu0 %v5059_v0  ;;  %4392 = vmatprep.subr.bf16.mxu1 %v5059_v0 }
  0xa7   :  { %4010 = vmatprep.mubr.msk.f32.mxu0 %vm5060_vm0, %v5061_v1  ;;  %4025 = vmatprep.mubr.msk.f32.mxu1 %vm5060_vm0, %v5061_v1 }
  0xa9   :  { %4384 = vmatpush3.bf16.msra.mxu0 %v5277_v7  ;;  %4394 = vmatpush3.bf16.msra.mxu1 %v5277_v7 }
  0xaa   :  { %4385 = vmatprep.subr.bf16.mxu0 %v5059_v0  ;;  %4395 = vmatprep.subr.bf16.mxu1 %v5059_v0 }
  0xad   :  { %4388 = vmatpush3.bf16.msk.msra.mxu0 %vm5294_vm3, %v5289_v10  ;;  %4398 = vmatpush3.bf16.msk.msra.mxu1 %vm5294_vm3, %v5289_v10 }
  0xae   :  { %4399 = vmatprep.subr.bf16.mxu0 %v5059_v0  ;;  %4409 = vmatprep.subr.bf16.mxu1 %v5059_v0 }
  0xb0   :  { %4011 = vmatmul.mubr.msk.f32.vlgmr.msra.gmra.mrb[4].mxu0 %vm160_vm4, %v3603_v16  ;;  %4026 = vmatmul.mubr.msk.f32.vlgmr.msra.gmra.mrb[4].mxu1 %vm160_vm4, %v3607_v17 }
  0xb1   :  { %4401 = vmatpush3.bf16.msra.mxu0 %v5270_v5  ;;  %4411 = vmatpush3.bf16.msra.mxu1 %v5270_v5 }
  0xb2   :  { %4402 = vmatprep.subr.bf16.mxu0 %v5059_v0  ;;  %4412 = vmatprep.subr.bf16.mxu1 %v5059_v0 }
  0xb3   :  { %4040 = vmatprep.mubr.msk.f32.mxu0 %vm5060_vm0, %v5061_v1  ;;  %4055 = vmatprep.mubr.msk.f32.mxu1 %vm5060_vm0, %v5061_v1 }
  0xb5   :  { %4404 = vmatpush3.bf16.msra.mxu0 %v5277_v7  ;;  %4414 = vmatpush3.bf16.msra.mxu1 %v5277_v7 }
  0xb6   :  { %4405 = vmatprep.subr.bf16.mxu0 %v5059_v0  ;;  %4415 = vmatprep.subr.bf16.mxu1 %v5059_v0 }
  0xb9   :  { %4408 = vmatpush3.bf16.msk.msra.mxu0 %vm5294_vm3, %v5289_v10  ;;  %4418 = vmatpush3.bf16.msk.msra.mxu1 %vm5294_vm3, %v5289_v10 }
  0xba   :  { %4419 = vmatprep.subr.bf16.mxu0 %v5059_v0  ;;  %4429 = vmatprep.subr.bf16.mxu1 %v5059_v0 }
  0xbc   :  { %4041 = vmatmul.mubr.msk.f32.vlgmr.msra.gmra.mrb[6].mxu0 %vm160_vm4, %v3611_v18  ;;  %4056 = vmatmul.mubr.msk.f32.vlgmr.msra.gmra.mrb[6].mxu1 %vm160_vm4, %v3615_v19 }
  0xbd   :  { %4421 = vmatpush3.bf16.msra.mxu0 %v5270_v5  ;;  %4431 = vmatpush3.bf16.msra.mxu1 %v5270_v5 }
  0xbe   :  { %4422 = vmatprep.subr.bf16.mxu0 %v5059_v0  ;;  %4070 = vmatprep.mubr.msk.f32.mxu0 %vm5060_vm0, %v5061_v1 }
  0xbf   :  { %4432 = vmatprep.subr.bf16.mxu1 %v5059_v0  ;;  %4085 = vmatprep.mubr.msk.f32.mxu1 %vm5060_vm0, %v5061_v1 }
  0xc1   :  { %4424 = vmatpush3.bf16.msra.mxu0 %v5277_v7  ;;  %4434 = vmatpush3.bf16.msra.mxu1 %v5277_v7  ;;  %v5511_v7 = vpack.c.bf16 %v3637_v61, %v3636_v60 }
  0xc2   :  { %4425 = vmatprep.subr.bf16.mxu0 %v5059_v0  ;;  %4435 = vmatprep.subr.bf16.mxu1 %v5059_v0 }
  0xc5   :  { %4428 = vmatpush3.bf16.msk.msra.mxu0 %vm5294_vm3, %v5289_v10  ;;  %4438 = vmatpush3.bf16.msk.msra.mxu1 %vm5294_vm3, %v5289_v10  ;;  %v3638_v10 = vld [vmem:[%s6166_s4 + $0x50] sm:$0xff] }
  0xc6   :  { %4439 = vmatprep.subr.bf16.mxu0 %v5059_v0  ;;  %4474 = vmatprep.subr.bf16.mxu1 %v5059_v0  ;;  %v5524_v17 = vpack.c.bf16 %v3639_v12, %v3638_v10 }
  0xc8   :  { %4071 = vmatmul.mubr.msk.f32.vlgmr.msra.gmra.mrb[8].mxu0 %vm160_vm4, %v3619_v20  ;;  %4086 = vmatmul.mubr.msk.f32.vlgmr.msra.gmra.mrb[8].mxu1 %vm160_vm4, %v3623_v21  ;;  %v3642_v20 = vld [vmem:[%s6166_s4 + $0x60] sm:$0xff]  ;;  %v3643_v21 = vld [vmem:[%s6166_s4 + $0x68] sm:$0xff] }
  0xc9   :  { %4096 = vmatprep.mubr.msk.f32.mxu0 %vm5060_vm0, %v5061_v1  ;;  %4151 = vmatprep.mubr.msk.f32.mxu1 %vm5060_vm0, %v5061_v1  ;;  %v5539_v26 = vpack.c.bf16 %v3643_v21, %v3642_v20 }
  0xca   :  { %4441 = vmatpush3.bf16.msra.mxu0 %v5436_v24  ;;  %4476 = vmatpush3.bf16.msra.mxu1 %v5463_v31 }
  0xcb   :  { %4442 = vmatprep.subr.bf16.mxu0 %v5059_v0  ;;  %4477 = vmatprep.subr.bf16.mxu1 %v5059_v0 }
  0xce   :  { %4445 = vmatpush3.bf16.msk.msra.mxu0 %vm5440_vm6, %v5451_v28  ;;  %4480 = vmatpush3.bf16.msk.msra.mxu1 %vm5440_vm6, %v5473_v34 }
  0xcf   :  { %4446 = vmatprep.subr.bf16.mxu0 %v5059_v0  ;;  %4481 = vmatprep.subr.bf16.mxu1 %v5059_v0 }
 0x16b   :  { %v234_v36 = vpop.f32.mrb[0].mxu0  ;;  %v315_v37 = vpop.f32.mrb[0].mxu1 }
 0x16c   :  { %v235_v38 = vadd.f32 %v5482_v35, %v234_v36  ;;  %v316_v39 = vadd.f32 %v5482_v35, %v315_v37  ;;  %v3952_v40 = vpop.f32.mrb[1].mxu0  ;;  %v3967_v41 = vpop.f32.mrb[1].mxu1 }
 0x16e   :  { %v239_v42 = vmin.f32 %v235_v38, 0.0  ;;  %v320_v43 = vmin.f32 %v316_v39, 0.0  ;;  %vm238_vm8 = vcmp.gt.f32.partialorder %v235_v38, 0.0  ;;  %vm319_vm9 = vcmp.gt.f32.partialorder %v316_v39, 0.0 }
 0x170   :  { %v240_v44 = vmul.f32 1.442695, %v239_v42  ;;  %v321_v45 = vmul.f32 1.442695, %v320_v43 }
 0x172   :  { %4816 = vpow2.f32 %v240_v44 }
 0x173   :  { %4818 = vpow2.f32 %v321_v45 }
 0x177   :  { %v396_v46 = vpop.f32.mrb[2].mxu0  ;;  %v477_v47 = vpop.f32.mrb[2].mxu1 }
 0x178   :  { %v5487_v48 = vadd.f32 %v5482_v35, %v396_v46  ;;  %v478_v49 = vadd.f32 %v5482_v35, %v477_v47  ;;  %v3982_v50 = vpop.f32.mrb[3].mxu0  ;;  %v3997_v51 = vpop.f32.mrb[3].mxu1 }
 0x17a   :  { %v401_v52 = vmin.f32 %v5487_v48, 0.0  ;;  %v482_v53 = vmin.f32 %v478_v49, 0.0  ;;  %vm481_vm10 = vcmp.gt.f32.partialorder %v478_v49, 0.0  ;;  %vm400_vm11 = vcmp.gt.f32.partialorder %v5487_v48, 0.0 }
 0x17c   :  { %v4817_v54 = vpop.eup %4816  ;;  %v402_v55 = vmul.f32 1.442695, %v401_v52  ;;  %v483_v56 = vmul.f32 1.442695, %v482_v53 }
 0x17d   :  { %v3590_v57 = vadd.f32 -1.0, %v4817_v54  ;;  %v4819_v59 = vpop.eup %4818 }
 0x17e   :  { %4820 = vpow2.f32 %v402_v55  ;;  %v3594_v62 = vadd.f32 -1.0, %v4819_v59 }
 0x17f   :  { %v243_v58 = vsel %vm238_vm8, %v235_v38, %v3590_v57  ;;  %4822 = vpow2.f32 %v483_v56 }
 0x180   :  { %4097 = vmatmul.mubr.msk.f32.vlgmr.msra.gmra.mrb[10].mxu0 %vm978_vm7, %v243_v58  ;;  %v324_v13 = vsel %vm319_vm9, %v316_v39, %v3594_v62  ;;  %v5559_v39 = vpack.c.bf16 %v3645_v29, %v3644_v27  ;;  %v3680_v27 = vld [vmem:[%s6168_s6 + $0x20] sm:$0xff] }
 0x181   :  { %4448 = vmatpush3.bf16.msra.mxu0 %v5463_v31  ;;  %4107 = vmatprep.mubr.msk.f32.mxu0 %vm5060_vm0, %v5061_v1 }
 0x182   :  { %4449 = vmatprep.subr.bf16.mxu0 %v5059_v0 }
 0x183   :  { %v558_v63 = vpop.f32.mrb[4].mxu0  ;;  %v639_v2 = vpop.f32.mrb[4].mxu1 }
 0x184   :  { %v5503_v3 = vadd.f32 %v5482_v35, %v558_v63  ;;  %v5506_v4 = vadd.f32 %v5482_v35, %v639_v2  ;;  %v4012_v5 = vpop.f32.mrb[5].mxu0  ;;  %v4027_v6 = vpop.f32.mrb[5].mxu1 }
 0x185   :  { %4452 = vmatpush3.bf16.msk.msra.mxu0 %vm5440_vm6, %v5473_v34  ;;  %v2205_v6 = vld [vmem:[%s6168_s6 + $0x8] sm:$0xff] }
 0x186   :  { %v563_v8 = vmin.f32 %v5503_v3, 0.0  ;;  %v644_v9 = vmin.f32 %v5506_v4, 0.0  ;;  %4453 = vmatprep.subr.bf16.mxu0 %v5059_v0  ;;  %vm562_vm12 = vcmp.gt.f32.partialorder %v5503_v3, 0.0  ;;  %vm643_vm13 = vcmp.gt.f32.partialorder %v5506_v4, 0.0 }
 0x188   :  { %v4821_v14 = vpop.eup %4820  ;;  %v564_v15 = vmul.f32 1.442695, %v563_v8  ;;  %4108 = vmatmul.mubr.msk.f32.vlgmr.msra.gmra.mrb[10].mxu0 %vm978_vm7, %v324_v13  ;;  %v645_v19 = vmul.f32 1.442695, %v644_v9  ;;  %v2206_v8 = vld [vmem:[%s6168_s6 + $0x10] sm:$0xf] }
 0x189   :  { %v4823_v16 = vpop.eup %4822  ;;  %4455 = vmatpush3.bf16.msra.mxu0 %v5511_v7  ;;  %4118 = vmatprep.mubr.msk.f32.mxu0 %vm5060_vm0, %v5061_v1  ;;  %v3598_v22 = vadd.f32 -1.0, %v4821_v14  ;;  %v3629_v9 = vld [vmem:[#allocation2] ss:$0 sm:$0xff] }
 0x18a   :  { %v3602_v18 = vadd.f32 -1.0, %v4823_v16  ;;  %4824 = vpow2.f32 %v564_v15  ;;  %4456 = vmatprep.subr.bf16.mxu0 %v5059_v0 }
 0x18b   :  { %4826 = vpow2.f32 %v645_v19  ;;  %v405_v30 = vsel %vm400_vm11, %v5487_v48, %v3598_v22 }
 0x18c   :  { %v486_v23 = vsel %vm481_vm10, %v478_v49, %v3602_v18 }
 0x18d   :  { %4459 = vmatpush3.bf16.msk.msra.mxu0 %vm5440_vm6, %v5524_v17  ;;  %4152 = vmatmul.mubr.msk.f32.vlgmr.msra.gmra.mrb[10].mxu1 %vm978_vm7, %v486_v23 }
 0x18e   :  { %4460 = vmatprep.subr.bf16.mxu0 %v5059_v0  ;;  %4483 = vmatpush3.bf16.msra.mxu1 %v5511_v7 }
 0x18f   :  { %v720_v32 = vpop.f32.mrb[6].mxu0  ;;  %v801_v33 = vpop.f32.mrb[6].mxu1  ;;  %4484 = vmatprep.subr.bf16.mxu1 %v5059_v0  ;;  %4162 = vmatprep.mubr.msk.f32.mxu1 %vm5060_vm0, %v5061_v1 }
 0x190   :  { %v5555_v36 = vadd.f32 %v5482_v35, %v720_v32  ;;  %4119 = vmatmul.mubr.msk.f32.vlgmr.msra.gmra.mrb[10].mxu0 %vm978_vm7, %v405_v30  ;;  %v4042_v37 = vpop.f32.mrb[7].mxu0  ;;  %v4057_v38 = vpop.f32.mrb[7].mxu1  ;;  %v5565_v41 = vadd.f32 %v5482_v35, %v801_v33 }
 0x191   :  { %4462 = vmatpush3.bf16.msra.mxu0 %v5539_v26  ;;  %4129 = vmatprep.mubr.msk.f32.mxu0 %vm5060_vm0, %v5061_v1 }
 0x192   :  { %v725_v40 = vmin.f32 %v5555_v36, 0.0  ;;  %4463 = vmatprep.subr.bf16.mxu0 %v5059_v0  ;;  %4487 = vmatpush3.bf16.msk.msra.mxu1 %vm5440_vm6, %v5524_v17  ;;  %v806_v45 = vmin.f32 %v5565_v41, 0.0  ;;  %vm724_vm14 = vcmp.gt.f32.partialorder %v5555_v36, 0.0  ;;  %vm805_vm15 = vcmp.gt.f32.partialorder %v5565_v41, 0.0 }
 0x193   :  { %4488 = vmatprep.subr.bf16.mxu1 %v5059_v0 }
 0x194   :  { %v4825_v42 = vpop.eup %4824  ;;  %v726_v43 = vmul.f32 1.442695, %v725_v40  ;;  %v807_v48 = vmul.f32 1.442695, %v806_v45 }
 0x195   :  { %v3606_v44 = vadd.f32 -1.0, %v4825_v42  ;;  %4466 = vmatpush3.bf16.msk.msra.mxu0 %vm5440_vm6, %v5559_v39  ;;  %v4827_v47 = vpop.eup %4826 }
 0x196   :  { %4828 = vpow2.f32 %v726_v43  ;;  %4467 = vmatprep.subr.bf16.mxu0 %v5059_v0  ;;  %v3610_v49 = vadd.f32 -1.0, %v4827_v47 }
 0x197   :  { %v567_v46 = vsel %vm562_vm12, %v5503_v3, %v3606_v44  ;;  %4830 = vpow2.f32 %v807_v48  ;;  %vm2688_vm12 = vcmask 1041408  }
 0x198   :  { %4130 = vmatmul.mubr.msk.f32.vlgmr.msra.gmra.mrb[10].mxu0 %vm978_vm7, %v486_v23  ;;  %4163 = vmatmul.mubr.msk.f32.vlgmr.msra.gmra.mrb[10].mxu1 %vm978_vm7, %v567_v46 }
 0x199   :  { %4469 = vmatpush3.bf16.msra.mxu0 %v5436_v24  ;;  %4490 = vmatpush3.bf16.msra.mxu1 %v5539_v26 }
 0x19a   :  { %4470 = vmatprep.subr.bf16.mxu0 %v5059_v0  ;;  %4491 = vmatprep.subr.bf16.mxu1 %v5059_v0 }
 0x19b   :  { %v882_v50 = vpop.f32.mrb[8].mxu0  ;;  %4140 = vmatprep.mubr.msk.f32.mxu0 %vm5060_vm0, %v5061_v1  ;;  %4173 = vmatprep.mubr.msk.f32.mxu1 %vm5060_vm0, %v5061_v1  ;;  %v963_v51 = vpop.f32.mrb[8].mxu1 }
 0x19c   :  { %v5591_v52 = vadd.f32 %v5482_v35, %v882_v50  ;;  %v5594_v53 = vadd.f32 %v5482_v35, %v963_v51  ;;  %v4072_v54 = vpop.f32.mrb[9].mxu0  ;;  %v4087_v55 = vpop.f32.mrb[9].mxu1  ;;  %v648_v35 = vsel %vm643_vm13, %v5506_v4, %v3610_v49  ;;  %vm5752_vm13 = vmpackc.low %vm2688_vm12, %vm5062_vm2  ;;  %vm2684_vm2 = vcmask 80896  }
 0x19d   :  { %4473 = vmatpush3.bf16.msk.msra.mxu0 %vm5440_vm6, %v5451_v28  ;;  %4494 = vmatpush3.bf16.msk.msra.mxu1 %vm5440_vm6, %v5559_v39 }
 0x19e   :  { %v887_v56 = vmin.f32 %v5591_v52, 0.0  ;;  %4495 = vmatprep.subr.bf16.mxu0 %v5059_v0  ;;  %4523 = vmatprep.subr.bf16.mxu1 %v5059_v0  ;;  %vm886_vm1 = vcmp.gt.f32.partialorder %v5591_v52, 0.0  ;;  %vm967_vm5 = vcmp.gt.f32.partialorder %v5594_v53, 0.0 }
 0x1a0   :  { %v4829_v57 = vpop.eup %4828  ;;  %4141 = vmatmul.mubr.msk.f32.vlgmr.msra.gmra.mrb[12].mxu0 %vm978_vm7, %v405_v30  ;;  %4174 = vmatmul.mubr.msk.f32.vlgmr.msra.gmra.mrb[10].mxu1 %vm978_vm7, %v648_v35  ;;  %v888_v58 = vmul.f32 1.442695, %v887_v56  ;;  %v2682_v56 = vld [vmem:[%s6170_s8] sm:$0xff] }
 0x1a1   :  { %4497 = vmatpush3.bf16.msra.mxu0 %v5436_v24  ;;  %4525 = vmatpush3.bf16.msra.mxu1 %v5436_v24  ;;  %v3614_v59 = vadd.f32 -1.0, %v4829_v57  ;;  %v968_v24 = vmin.f32 %v5594_v53, 0.0  ;;  %v4831_v61 = vpop.eup %4830 }
 0x1a2   :  { %4498 = vmatprep.subr.bf16.mxu0 %v5059_v0  ;;  %4526 = vmatprep.subr.bf16.mxu1 %v5059_v0  ;;  %4832 = vpow2.f32 %v888_v58  ;;  %v3618_v62 = vadd.f32 -1.0, %v4831_v61 }
 0x1a3   :  { %4184 = vmatprep.mubr.msk.f32.mxu0 %vm5060_vm0, %v5061_v1  ;;  %4228 = vmatprep.mubr.msk.f32.mxu1 %vm5060_vm0, %v5061_v1  ;;  %v729_v60 = vsel %vm724_vm14, %v5555_v36, %v3614_v59  ;;  %v3681_v36 = vld [vmem:[%s6168_s6 + $0x28] sm:$0xf]  ;;  %v3678_v59 = vld [vmem:[#allocation5] ss:$0 sm:$0xff] }
 0x1a5   :  { %4501 = vmatpush3.bf16.msk.msra.mxu0 %vm5440_vm6, %v5451_v28  ;;  %4529 = vmatpush3.bf16.msk.msra.mxu1 %vm5440_vm6, %v5451_v28  ;;  %v969_v28 = vmul.f32 1.442695, %v968_v24 }
 0x1a6   :  { %4502 = vmatprep.subr.bf16.mxu0 %v5059_v0  ;;  %4530 = vmatprep.subr.bf16.mxu1 %v5059_v0 }
 0x1a7   :  { %4834 = vpow2.f32 %v969_v28 }
 0x1a8   :  { %4185 = vmatmul.mubr.msk.f32.vlgmr.msra.gmra.mrb[14].mxu0 %vm978_vm7, %v567_v46  ;;  %4229 = vmatmul.mubr.msk.f32.vlgmr.msra.gmra.mrb[12].mxu1 %vm978_vm7, %v729_v60 }
 0x1a9   :  { %4504 = vmatpush3.bf16.msra.mxu0 %v5463_v31  ;;  %4532 = vmatpush3.bf16.msra.mxu1 %v5463_v31  ;;  %v810_v31 = vsel %vm805_vm15, %v5565_v41, %v3618_v62 }
 0x1aa   :  { %4505 = vmatprep.subr.bf16.mxu0 %v5059_v0  ;;  %4533 = vmatprep.subr.bf16.mxu1 %v5059_v0 }
 0x1ab   :  { %4195 = vmatprep.mubr.msk.f32.mxu0 %vm5060_vm0, %v5061_v1  ;;  %4239 = vmatprep.mubr.msk.f32.mxu1 %vm5060_vm0, %v5061_v1 }
 0x1ac   :  { %v4833_v63 = vpop.eup %4832 }
 0x1ad   :  { %4508 = vmatpush3.bf16.msk.msra.mxu0 %vm5440_vm6, %v5473_v34  ;;  %4536 = vmatpush3.bf16.msk.msra.mxu1 %vm5440_vm6, %v5473_v34  ;;  %v3622_v34 = vadd.f32 -1.0, %v4833_v63  ;;  %v3699_v63 = vld [vmem:[%s6170_s8 + $0x18] sm:$0x3] }
 0x1ae   :  { %4509 = vmatprep.subr.bf16.mxu0 %v5059_v0  ;;  %4537 = vmatprep.subr.bf16.mxu1 %v5059_v0 }
 0x1af   :  { %v891_v2 = vsel %vm886_vm1, %v5591_v52, %v3622_v34 }
 0x1b0   :  { %4196 = vmatmul.mubr.msk.f32.vlgmr.msra.gmra.mrb[14].mxu0 %vm978_vm7, %v648_v35  ;;  %4240 = vmatmul.mubr.msk.f32.vlgmr.msra.gmra.mrb[12].mxu1 %vm978_vm7, %v810_v31  ;;  %v2683_v35 = vld [vmem:[%s6170_s8 + $0x8] sm:$0x3] }
 0x1b1   :  { %4511 = vmatpush3.bf16.msra.mxu0 %v5511_v7  ;;  %4539 = vmatpush3.bf16.msra.mxu1 %v5511_v7  ;;  %v4835_v3 = vpop.eup %4834  ;;  %v4552_v7 = vpack.c.bf16 %v2205_v6, %v2204_v25  ;;  %v4570_v57 = vpack.c.bf16 %v2683_v35, %v2682_v56  ;;  %v3150_v56 = vld [vmem:[%s6175_s13 + $0x50] sm:$0xff]  ;;  %v3153_v35 = vld [vmem:[%s6175_s13 + $0x68] sm:$0xff] }
 0x1b2   :  { %4512 = vmatprep.subr.bf16.mxu0 %v5059_v0  ;;  %4540 = vmatprep.subr.bf16.mxu1 %v5059_v0  ;;  %v3626_v4 = vadd.f32 -1.0, %v4835_v3 }
 0x1b3   :  { %4206 = vmatprep.mubr.msk.f32.mxu0 %vm5060_vm0, %v5061_v1  ;;  %4250 = vmatprep.mubr.msk.f32.mxu1 %vm5060_vm0, %v5061_v1 }
 0x1b4   :  { %v972_v5 = vsel %vm967_vm5, %v5594_v53, %v3626_v4 }
 0x1b5   :  { %4515 = vmatpush3.bf16.msk.msra.mxu0 %vm5440_vm6, %v5524_v17  ;;  %4543 = vmatpush3.bf16.msk.msra.mxu1 %vm5440_vm6, %v5524_v17 }
 0x1b6   :  { %4516 = vmatprep.subr.bf16.mxu0 %v5059_v0  ;;  %4544 = vmatprep.subr.bf16.mxu1 %v5059_v0 }
 0x1b8   :  { %4207 = vmatmul.mubr.msk.f32.vlgmr.msra.gmra.mrb[14].mxu0 %vm978_vm7, %v729_v60  ;;  %4251 = vmatmul.mubr.msk.f32.vlgmr.msra.gmra.mrb[12].mxu1 %vm978_vm7, %v891_v2 }
 0x1b9   :  { %4518 = vmatpush3.bf16.msra.mxu0 %v5539_v26  ;;  %4546 = vmatpush3.bf16.msra.mxu1 %v5539_v26  ;;  %v3679_v26 = vld [vmem:[%s6168_s6 + $0x18] sm:$0xff] }
 0x1ba   :  { %4519 = vmatprep.subr.bf16.mxu0 %v5059_v0  ;;  %4547 = vmatprep.subr.bf16.mxu1 %v5059_v0  ;;  %v4555_v32 = vpack.c.bf16 %v3680_v27, %v3679_v26  ;;  %v2951_v26 = vld [vmem:[%s6173_s11 + $0x18] sm:$0xff] }
 0x1bb   :  { %4217 = vmatprep.mubr.msk.f32.mxu0 %vm5060_vm0, %v5061_v1  ;;  %4261 = vmatprep.mubr.msk.f32.mxu1 %vm5060_vm0, %v5061_v1 }
 0x1bd   :  { %4522 = vmatpush3.bf16.msk.msra.mxu0 %vm5440_vm6, %v5559_v39  ;;  %4550 = vmatpush3.bf16.msk.msra.mxu1 %vm5440_vm6, %v5559_v39  ;;  %vm2211_vm6 = vcmask 1043456  }
 0x1be   :  { %4551 = vmatprep.subr.bf16.mxu0 %v5059_v0  ;;  %4557 = vmatprep.subr.bf16.mxu1 %v5059_v0 }
 0x1c0   :  { %4218 = vmatmul.mubr.msk.f32.vlgmr.msra.gmra.mrb[14].mxu0 %vm978_vm7, %v810_v31  ;;  %4262 = vmatmul.mubr.msk.f32.vlgmr.msra.gmra.mrb[12].mxu1 %vm978_vm7, %v972_v5  ;;  %vm2207_vm7 = vcmask 162816   ;;  %v3698_v31 = vld [vmem:[%s6170_s8 + $0x10] sm:$0xff] }
 0x1c1   :  { %4270 = vmatprep.mubr.msk.f32.mxu0 %vm5060_vm0, %v5061_v1  ;;  %4288 = vmatprep.mubr.msk.f32.mxu1 %vm5060_vm0, %v5061_v1  ;;  %v4574_v3 = vpack.c.bf16 %v3699_v63, %v3698_v31  ;;  %v3156_v63 = vld [vmem:[%s6175_s13 + $0x80] sm:$0xff] }
 0x1c2   :  { %4553 = vmatpush3.bf16.msra.mxu0 %v4552_v7  ;;  %4559 = vmatpush3.bf16.msra.mxu1 %v4552_v7 }
 0x1c3   :  { %4268 = vmatprep.subr.mxu0 %v5061_v1  ;;  %4286 = vmatprep.subr.mxu1 %v5061_v1 }
 0x1c6   :  { %4269 = vmatpush3.msk.msra.mxu0 %vm2211_vm6, %v2206_v8  ;;  %4287 = vmatpush3.msk.msra.mxu1 %vm2211_vm6, %v2206_v8 }
 0x1c7   :  { %4554 = vmatprep.subr.bf16.mxu0 %v5059_v0  ;;  %4560 = vmatprep.subr.bf16.mxu1 %v5059_v0 }
 0x26b   :  { %v1304_v10 = vpop.f32.mrb[10].mxu0 }
 0x26c   :  { %v4759_v12 = vadd.f32 %v3629_v9, %v1304_v10  ;;  %v4131_v13 = vpop.f32.mrb[11].mxu0 }
 0x26e   :  { %v1310_v14 = vmin.f32 %v4759_v12, 0.0  ;;  %vm1309_vm8 = vcmp.gt.f32.partialorder %v4759_v12, 0.0 }
 0x270   :  { %v1311_v15 = vmul.f32 1.442695, %v1310_v14 }
 0x272   :  { %4836 = vpow2.f32 %v1311_v15  ;;  %v3702_v15 = vld [vmem:[%s6170_s8 + $0x20] sm:$0xff] }
 0x273   :  { %v1381_v16 = vpop.f32.mrb[12].mxu0  ;;  %v1600_v17 = vpop.f32.mrb[10].mxu1 }
 0x274   :  { %v1385_v18 = vadd.f32 %v3629_v9, %v1381_v16  ;;  %v4142_v19 = vpop.f32.mrb[13].mxu0  ;;  %v4175_v20 = vpop.f32.mrb[11].mxu1 }
 0x276   :  { %v4761_v21 = vadd.f32 %v1600_v17, %v1385_v18 }
 0x278   :  { %v1606_v22 = vmin.f32 %v4761_v21, 0.0  ;;  %vm1605_vm9 = vcmp.gt.f32.partialorder %v4761_v21, 0.0 }
 0x27a   :  { %v1607_v23 = vmul.f32 1.442695, %v1606_v22 }
 0x27c   :  { %v4837_v29 = vpop.eup %4836  ;;  %4838 = vpow2.f32 %v1607_v23  ;;  %v2949_v23 = vld [vmem:[%s6173_s11 + $0x8] sm:$0xff] }
 0x27d   :  { %v3648_v30 = vadd.f32 -1.0, %v4837_v29  ;;  %v4581_v27 = vpack.c.bf16 %v2951_v26, %v2949_v23  ;;  %v2948_v29 = vld [vmem:[%s6173_s11] sm:$0xff]  ;;  %v3174_v26 = vld [vmem:[%s6175_s13 + $0x110] sm:$0xff] }
 0x27e   :  { %v3172_v23 = vld [vmem:[%s6175_s13 + $0x100] sm:$0xff] }
 0x27f   :  { %v1314_v33 = vsel %vm1309_vm8, %v4759_v12, %v3648_v30  ;;  %v2950_v30 = vld [vmem:[%s6173_s11 + $0x10] sm:$0xff] }
 0x280   :  { %4271 = vmatmul.mubr.msk.f32.vlgmr.msra.gmra.mrb[16].mxu0 %vm2207_vm7, %v1314_v33  ;;  %v2953_v33 = vld [vmem:[%s6173_s11 + $0x28] sm:$0xf] }
 0x281   :  { %4556 = vmatpush3.bf16.msra.mxu0 %v4555_v32  ;;  %4279 = vmatprep.mubr.msk.f32.mxu0 %vm5060_vm0, %v5061_v1 }
 0x282   :  { %4277 = vmatprep.subr.mxu0 %v5061_v1 }
 0x285   :  { %4278 = vmatpush3.msk.msra.mxu0 %vm2211_vm6, %v3681_v36 }
 0x286   :  { %v4839_v37 = vpop.eup %4838  ;;  %4563 = vmatprep.subr.bf16.mxu0 %v5059_v0 }
 0x287   :  { %v3657_v38 = vadd.f32 -1.0, %v4839_v37  ;;  %v2939_v37 = vld [vmem:[%s6172_s10 + $0x18] sm:$0xff] }
 0x289   :  { %v1610_v39 = vsel %vm1605_vm9, %v4761_v21, %v3657_v38  ;;  %v2952_v38 = vld [vmem:[%s6173_s11 + $0x20] sm:$0xf]  ;;  %vm3567_vm9 = vcmask 91136  }
 0x28a   :  { %4280 = vmatmul.mubr.msk.f32.vlgmr.msra.gmra.mrb[16].mxu0 %vm2207_vm7, %v1610_v39  ;;  %4289 = vmatmul.mubr.msk.f32.vlgmr.msra.gmra.mrb[14].mxu1 %vm2207_vm7, %v1610_v39 }
 0x28b   :  { %4562 = vmatpush3.bf16.msra.mxu1 %v4555_v32  ;;  %4565 = vmatpush3.bf16.msra.mxu0 %v4552_v7 }
 0x28c   :  { %4295 = vmatprep.subr.mxu1 %v5061_v1  ;;  %4304 = vmatprep.subr.mxu0 %v5061_v1 }
 0x28d   :  { %4297 = vmatprep.mubr.msk.f32.mxu1 %vm5060_vm0, %v5061_v1  ;;  %4306 = vmatprep.mubr.msk.f32.mxu0 %vm5060_vm0, %v5061_v1 }
 0x28f   :  { %4296 = vmatpush3.msk.msra.mxu1 %vm2211_vm6, %v3681_v36  ;;  %4305 = vmatpush3.msk.msra.mxu0 %vm2211_vm6, %v2206_v8 }
 0x290   :  { %4566 = vmatprep.subr.bf16.mxu0 %v5059_v0  ;;  %4569 = vmatprep.subr.bf16.mxu1 %v5059_v0 }
 0x293   :  { %v1896_v40 = vpop.f32.mrb[14].mxu0  ;;  %v2192_v41 = vpop.f32.mrb[12].mxu1 }
 0x294   :  { %v4762_v42 = vadd.f32 %v3629_v9, %v1896_v40  ;;  %v4763_v43 = vadd.f32 %v3629_v9, %v2192_v41  ;;  %v4219_v44 = vpop.f32.mrb[15].mxu0  ;;  %v4263_v45 = vpop.f32.mrb[13].mxu1  ;;  %v3141_v40 = vld [vmem:[%s6175_s13 + $0x8] sm:$0xff]  ;;  %v3143_v41 = vld [vmem:[%s6175_s13 + $0x18] sm:$0xff] }
 0x295   :  { %v3142_v44 = vld [vmem:[%s6175_s13 + $0x10] sm:$0xff]  ;;  %v3145_v45 = vld [vmem:[%s6175_s13 + $0x28] sm:$0xff] }
 0x296   :  { %v1902_v46 = vmin.f32 %v4762_v42, 0.0  ;;  %v2198_v47 = vmin.f32 %v4763_v43, 0.0  ;;  %vm1901_vm10 = vcmp.gt.f32.partialorder %v4762_v42, 0.0  ;;  %vm2197_vm11 = vcmp.gt.f32.partialorder %v4763_v43, 0.0 }
 0x298   :  { %v1903_v48 = vmul.f32 1.442695, %v1902_v46  ;;  %v2199_v49 = vmul.f32 1.442695, %v2198_v47  ;;  %v3147_v46 = vld [vmem:[%s6175_s13 + $0x38] sm:$0xff] }
 0x29a   :  { %4840 = vpow2.f32 %v1903_v48  ;;  %v4603_v48 = vpack.c.bf16 %v3147_v46, %v3145_v45 }
 0x29b   :  { %4842 = vpow2.f32 %v2199_v49  ;;  %v3144_v49 = vld [vmem:[%s6175_s13 + $0x20] sm:$0xff] }
 0x2a4   :  { %v4841_v50 = vpop.eup %4840 }
 0x2a5   :  { %v3666_v51 = vadd.f32 -1.0, %v4841_v50  ;;  %v4843_v53 = vpop.eup %4842  ;;  %v3146_v50 = vld [vmem:[%s6175_s13 + $0x30] sm:$0xff] }
 0x2a6   :  { %v3675_v54 = vadd.f32 -1.0, %v4843_v53  ;;  %v4605_v53 = vpack.c.bf16 %v3146_v50, %v3144_v49  ;;  %v2941_v49 = vld [vmem:[%s6172_s10 + $0x28] sm:$0xff]  ;;  %v2943_v50 = vld [vmem:[%s6172_s10 + $0x38] sm:$0xff] }
 0x2a7   :  { %v1906_v52 = vsel %vm1901_vm10, %v4762_v42, %v3666_v51  ;;  %v3140_v42 = vld [vmem:[%s6175_s13] sm:$0xff]  ;;  %v3149_v51 = vld [vmem:[%s6175_s13 + $0x48] sm:$0xff] }
 0x2a8   :  { %4298 = vmatmul.mubr.msk.f32.vlgmr.msra.gmra.mrb[14].mxu1 %vm2207_vm7, %v1906_v52  ;;  %4307 = vmatmul.mubr.msk.f32.vlgmr.msra.gmra.mrb[18].mxu0 %vm2207_vm7, %v1906_v52  ;;  %v2202_v55 = vsel %vm2197_vm11, %v4763_v43, %v3675_v54  ;;  %v4599_v43 = vpack.c.bf16 %v3143_v41, %v3141_v40  ;;  %v4601_v47 = vpack.c.bf16 %v3142_v44, %v3140_v42  ;;  %v3151_v52 = vld [vmem:[%s6175_s13 + $0x58] sm:$0xff]  ;;  %v3697_v41 = vld [vmem:[%s6171_s9] ss:$0 sm:$0xff] }
 0x2a9   :  { %4568 = vmatpush3.bf16.msra.mxu0 %v4555_v32  ;;  %4315 = vmatprep.mubr.msk.f32.mxu0 %vm5060_vm0, %v5061_v1  ;;  %v4583_v32 = vpack.c.bf16 %v2950_v30, %v2948_v29  ;;  %v4607_v54 = vpack.c.bf16 %v3151_v52, %v3149_v51  ;;  %v3179_v29 = vld [vmem:[%s6175_s13 + $0x138] sm:$0xff]  ;;  %v4633_v30 = vpack.c.bf16 %v3174_v26, %v3172_v23 }
 0x2aa   :  { %4313 = vmatprep.subr.mxu0 %v5061_v1  ;;  %4322 = vmatprep.mubr.msk.f32.mxu1 %vm5060_vm0, %v5061_v1  ;;  %v3203_v23 = vld [vmem:[%s6175_s13 + $0x1f8] sm:$0xff] }
 0x2ab   :  { %4572 = vmatpush3.bf16.msk.msra.mxu1 %vm5752_vm13, %v4570_v57  ;;  %v3155_v57 = vld [vmem:[%s6175_s13 + $0x78] sm:$0xff] }
 0x2ac   :  { %4573 = vmatprep.subr.bf16.mxu1 %v5059_v0 }
 0x2ad   :  { %4314 = vmatpush3.msk.msra.mxu0 %vm2211_vm6, %v3681_v36  ;;  %v2937_v36 = vld [vmem:[%s6172_s10 + $0x8] sm:$0xff] }
 0x2ae   :  { %4582 = vmatprep.subr.bf16.mxu0 %v4581_v27  ;;  %v4585_v39 = vpack.c.bf16 %v2939_v37, %v2937_v36  ;;  %v3177_v27 = vld [vmem:[%s6175_s13 + $0x128] sm:$0xff]  ;;  %v3178_v36 = vld [vmem:[%s6175_s13 + $0x130] sm:$0xff] }
 0x2af   :  { %v3181_v37 = vld [vmem:[%s6175_s13 + $0x148] sm:$0xff] }
 0x2b0   :  { %4316 = vmatmul.mubr.msk.f32.vlgmr.msra.gmra.mrb[18].mxu0 %vm2207_vm7, %v2202_v55  ;;  %v3148_v55 = vld [vmem:[%s6175_s13 + $0x40] sm:$0xff] }
 0x2b1   :  { %3027 = vmatprep.mubr.f32.mxu0 %v5061_v1  ;;  %4584 = vmatpush1.bf16.msra.mxu0 %v4583_v32  ;;  %v4609_v58 = vpack.c.bf16 %v3150_v56, %v3148_v55  ;;  %v4635_v32 = vpack.c.bf16 %v3179_v29, %v3177_v27  ;;  %v2940_v55 = vld [vmem:[%s6172_s10 + $0x20] sm:$0xff]  ;;  %v2942_v56 = vld [vmem:[%s6172_s10 + $0x30] sm:$0xff] }
 0x2b2   :  { %3707 = vmatprep.subr.msk.mxu0 %vm2211_vm6, %v2953_v33  ;;  %v3176_v33 = vld [vmem:[%s6175_s13 + $0x120] sm:$0xff] }
 0x2b3   :  { %v3200_v29 = vld [vmem:[%s6175_s13 + $0x1e0] sm:$0xff] }
 0x2b5   :  { %3708 = vmatpush1.msk.msra.mxu0 %vm2211_vm6, %v2952_v38  ;;  %v3183_v38 = vld [vmem:[%s6175_s13 + $0x158] sm:$0xff] }
 0x2b6   :  { %4586 = vmatprep.subr.bf16.mxu0 %v4585_v39  ;;  %v4637_v39 = vpack.c.bf16 %v3178_v36, %v3176_v33  ;;  %v4639_v40 = vpack.c.bf16 %v3183_v38, %v3181_v37  ;;  %v3300_v33 = vld [vmem:[#allocation10 + $0x8] sm:$0xff]  ;;  %v3302_v36 = vld [vmem:[#allocation10 + $0x18] sm:$0xff]  ;;  %v3299_v37 = vld [vmem:[#allocation10] sm:$0xff] }
 0x2b7   :  { %v4663_v38 = vpack.c.bf16 %v3302_v36, %v3300_v33 }
 0x35d   :  { %v2368_v24 = vpop.f32.mrb[16].mxu0 }
 0x35e   :  { %v4764_v60 = vadd.f32 %v3678_v59, %v2368_v24  ;;  %v4281_v61 = vpop.f32.mrb[17].mxu0  ;;  %v3152_v24 = vld [vmem:[%s6175_s13 + $0x60] sm:$0xff] }
 0x35f   :  { %v3157_v61 = vld [vmem:[%s6175_s13 + $0x88] sm:$0xff] }
 0x360   :  { %v2374_v28 = vmin.f32 %v4764_v60, 0.0  ;;  %vm2373_vm14 = vcmp.gt.f32.partialorder %v4764_v60, 0.0 }
 0x362   :  { %v2375_v62 = vmul.f32 1.442695, %v2374_v28  ;;  %v3159_v28 = vld [vmem:[%s6175_s13 + $0x98] sm:$0xff] }
 0x363   :  { %v4615_v31 = vpack.c.bf16 %v3159_v28, %v3157_v61  ;;  %v2946_v61 = vld [vmem:[%s6172_s10 + $0x50] sm:$0x1f] }
 0x364   :  { %4844 = vpow2.f32 %v2375_v62 }
 0x36e   :  { %v4845_v34 = vpop.eup %4844 }
 0x36f   :  { %v3684_v2 = vadd.f32 -1.0, %v4845_v34  ;;  %v3158_v34 = vld [vmem:[%s6175_s13 + $0x90] sm:$0xff] }
 0x371   :  { %v2378_v4 = vsel %vm2373_vm14, %v4764_v60, %v3684_v2  ;;  %v3154_v60 = vld [vmem:[%s6175_s13 + $0x70] sm:$0xff]  ;;  %v3161_v2 = vld [vmem:[%s6175_s13 + $0xa8] sm:$0xff] }
 0x372   :  { %4323 = vmatmul.mubr.msk.f32.vlgmr.msra.gmra.mrb[16].mxu1 %vm2684_vm2, %v2378_v4  ;;  %v4613_v62 = vpack.c.bf16 %v3154_v60, %v3152_v24  ;;  %v4617_v4 = vpack.c.bf16 %v3158_v34, %v3156_v63  ;;  %v2944_v60 = vld [vmem:[%s6172_s10 + $0x40] sm:$0xff]  ;;  %v3187_v34 = vld [vmem:[%s6175_s13 + $0x178] sm:$0xff] }
 0x373   :  { %4576 = vmatpush3.bf16.msk.msra.mxu1 %vm5752_vm13, %v4574_v3  ;;  %4329 = vmatprep.mubr.msk.f32.mxu1 %vm5060_vm0, %v5061_v1  ;;  %v3163_v3 = vld [vmem:[%s6175_s13 + $0xb8] sm:$0xff]  ;;  %v4596_v28 = vpack.c.bf16 %v2946_v61, %v2944_v60  ;;  %v3315_v60 = vld [vmem:[#allocation10 + $0x80] sm:$0xff] }
 0x374   :  { %4577 = vmatprep.subr.bf16.mxu1 %v5059_v0  ;;  %v3703_v0 = vld [vmem:[%s6170_s8 + $0x28] sm:$0x3]  ;;  %v3317_v61 = vld [vmem:[#allocation10 + $0x90] sm:$0xff] }
 0x375   :  { %v4578_v18 = vpack.c.bf16 %v3703_v0, %v3702_v15  ;;  %v3171_v15 = vld [vmem:[%s6175_s13 + $0xf8] sm:$0xff] }
 0x37b   :  { %v2519_v5 = vpop.f32.mrb[14].mxu1 }
 0x37c   :  { %v4765_v25 = vadd.f32 %v3678_v59, %v2519_v5  ;;  %v4299_v6 = vpop.f32.mrb[15].mxu1  ;;  %v4619_v5 = vpack.c.bf16 %v3163_v3, %v3161_v2  ;;  %v4643_v2 = vpack.c.bf16 %v3187_v34, %v3185_v11  ;;  %v3184_v3 = vld [vmem:[%s6175_s13 + $0x160] sm:$0xff]  ;;  %v3321_v11 = vld [vmem:[#allocation10 + $0xb0] sm:$0xff]  ;;  %v3324_v34 = vld [vmem:[#allocation10 + $0xc8] sm:$0xff] }
 0x37d   :  { %v3162_v6 = vld [vmem:[%s6175_s13 + $0xb0] sm:$0xff] }
 0x37e   :  { %v2525_v7 = vmin.f32 %v4765_v25, 0.0  ;;  %vm2524_vm15 = vcmp.gt.f32.partialorder %v4765_v25, 0.0 }
 0x380   :  { %v2526_v8 = vmul.f32 1.442695, %v2525_v7  ;;  %v3165_v7 = vld [vmem:[%s6175_s13 + $0xc8] sm:$0xff] }
 0x382   :  { %4846 = vpow2.f32 %v2526_v8  ;;  %v3167_v8 = vld [vmem:[%s6175_s13 + $0xd8] sm:$0xff] }
 0x383   :  { %v2670_v9 = vpop.f32.mrb[18].mxu0 }
 0x384   :  { %v4766_v10 = vadd.f32 %v3678_v59, %v2670_v9  ;;  %v4317_v12 = vpop.f32.mrb[19].mxu0  ;;  %v4611_v59 = vpack.c.bf16 %v3155_v57, %v3153_v35  ;;  %v2945_v57 = vld [vmem:[%s6172_s10 + $0x48] sm:$0xff] }
 0x385   :  { %v3164_v12 = vld [vmem:[%s6175_s13 + $0xc0] sm:$0xff] }
 0x386   :  { %v2676_v13 = vmin.f32 %v4766_v10, 0.0  ;;  %vm2675_vm1 = vcmp.gt.f32.partialorder %v4766_v10, 0.0 }
 0x388   :  { %v2677_v14 = vmul.f32 1.442695, %v2676_v13  ;;  %v3166_v13 = vld [vmem:[%s6175_s13 + $0xd0] sm:$0xff] }
 0x389   :  { %v4625_v0 = vpack.c.bf16 %v3166_v13, %v3164_v12  ;;  %v3193_v12 = vld [vmem:[%s6175_s13 + $0x1a8] sm:$0xff]  ;;  %v3195_v13 = vld [vmem:[%s6175_s13 + $0x1b8] sm:$0xff] }
 0x38a   :  { %4848 = vpow2.f32 %v2677_v14  ;;  %v3169_v14 = vld [vmem:[%s6175_s13 + $0xe8] sm:$0xff] }
 0x38c   :  { %v4847_v16 = vpop.eup %4846 }
 0x38d   :  { %v3689_v17 = vadd.f32 -1.0, %v4847_v16  ;;  %v4627_v16 = vpack.c.bf16 %v3171_v15, %v3169_v14  ;;  %v3192_v14 = vld [vmem:[%s6175_s13 + $0x1a0] sm:$0xff]  ;;  %v4651_v15 = vpack.c.bf16 %v3195_v13, %v3193_v12  ;;  %v3329_v12 = vld [vmem:[#allocation10 + $0xf0] sm:$0xff]  ;;  %v3332_v13 = vld [vmem:[#allocation10 + $0x108] sm:$0xff] }
 0x38f   :  { %v2529_v19 = vsel %vm2524_vm15, %v4765_v25, %v3689_v17  ;;  %v3160_v25 = vld [vmem:[%s6175_s13 + $0xa0] sm:$0xff] }
 0x390   :  { %4330 = vmatmul.mubr.msk.f32.vlgmr.msra.gmra.mrb[16].mxu1 %vm2684_vm2, %v2529_v19  ;;  %v4621_v9 = vpack.c.bf16 %v3162_v6, %v3160_v25  ;;  %v3168_v17 = vld [vmem:[%s6175_s13 + $0xe0] sm:$0xff]  ;;  %v3173_v19 = vld [vmem:[%s6175_s13 + $0x108] sm:$0xff]  ;;  %v3191_v6 = vld [vmem:[%s6175_s13 + $0x198] sm:$0xff] }
 0x391   :  { %4580 = vmatpush3.bf16.msk.msra.mxu1 %vm5752_vm13, %v4578_v18  ;;  %4336 = vmatprep.mubr.msk.f32.mxu1 %vm5060_vm0, %v5061_v1  ;;  %v3170_v18 = vld [vmem:[%s6175_s13 + $0xf0] sm:$0xff]  ;;  %v3189_v25 = vld [vmem:[%s6175_s13 + $0x188] sm:$0xff] }
 0x392   :  { %4600 = vmatprep.subr.bf16.mxu1 %v4599_v43 }
 0x394   :  { %v4849_v20 = vpop.eup %4848 }
 0x395   :  { %v3694_v21 = vadd.f32 -1.0, %v4849_v20  ;;  %v3175_v20 = vld [vmem:[%s6175_s13 + $0x118] sm:$0xff] }
 0x397   :  { %v2680_v22 = vsel %vm2675_vm1, %v4766_v10, %v3694_v21  ;;  %v4623_v10 = vpack.c.bf16 %v3167_v8, %v3165_v7  ;;  %v4629_v21 = vpack.c.bf16 %v3170_v18, %v3168_v17  ;;  %v4647_v7 = vpack.c.bf16 %v3191_v6, %v3189_v25  ;;  %v3188_v8 = vld [vmem:[%s6175_s13 + $0x180] sm:$0xff]  ;;  %v3199_v17 = vld [vmem:[%s6175_s13 + $0x1d8] sm:$0xff]  ;;  %v3328_v6 = vld [vmem:[#allocation10 + $0xe8] sm:$0xff] }
 0x398   :  { %4337 = vmatmul.mubr.msk.f32.vlgmr.msra.gmra.mrb[16].mxu1 %vm2684_vm2, %v2680_v22  ;;  %v4631_v22 = vpack.c.bf16 %v3175_v20, %v3173_v19  ;;  %v3196_v20 = vld [vmem:[%s6175_s13 + $0x1c0] sm:$0xff]  ;;  %v3325_v25 = vld [vmem:[#allocation10 + $0xd0] sm:$0xff] }
 0x399   :  { %4602 = vmatpush1.bf16.msra.mxu1 %v4601_v47  ;;  %v2936_v47 = vld [vmem:[%s6172_s10] sm:$0xff] }
 0x39a   :  { %4604 = vmatprep.subr.bf16.mxu1 %v4603_v48  ;;  %v2938_v48 = vld [vmem:[%s6172_s10 + $0x10] sm:$0xff] }
 0x39d   :  { %4606 = vmatpush1.bf16.msra.mxu1 %v4605_v53  ;;  %v4587_v53 = vpack.c.bf16 %v2938_v48, %v2936_v47  ;;  %v3310_v47 = vld [vmem:[#allocation10 + $0x58] sm:$0xff] }
 0x39e   :  { %4608 = vmatprep.subr.bf16.mxu1 %v4607_v54  ;;  %v4589_v54 = vpack.c.bf16 %v2943_v50, %v2941_v49  ;;  %v3307_v50 = vld [vmem:[#allocation10 + $0x40] sm:$0xff] }
 0x3a1   :  { %4610 = vmatpush1.bf16.msra.mxu1 %v4609_v58  ;;  %v2947_v58 = vld [vmem:[%s6172_s10 + $0x58] sm:$0x1f] }
 0x3a2   :  { %4612 = vmatprep.subr.bf16.mxu1 %v4611_v59  ;;  %v4591_v59 = vpack.c.bf16 %v2942_v56, %v2940_v55  ;;  %v4593_v24 = vpack.c.bf16 %v2947_v58, %v2945_v57  ;;  %v3311_v56 = vld [vmem:[#allocation10 + $0x60] sm:$0xff]  ;;  %v3316_v57 = vld [vmem:[#allocation10 + $0x88] sm:$0xff]  ;;  %v3318_v58 = vld [vmem:[#allocation10 + $0x98] sm:$0xff] }
 0x3a5   :  { %4614 = vmatpush1.bf16.msra.mxu1 %v4613_v62  ;;  %v3180_v62 = vld [vmem:[%s6175_s13 + $0x140] sm:$0xff] }
 0x3a6   :  { %4616 = vmatprep.subr.bf16.mxu1 %v4615_v31  ;;  %v3182_v31 = vld [vmem:[%s6175_s13 + $0x150] sm:$0xff] }
 0x3a7   :  { %v4641_v63 = vpack.c.bf16 %v3182_v31, %v3180_v62  ;;  %v4681_v62 = vpack.c.bf16 %v3317_v61, %v3315_v60  ;;  %v3345_v60 = vld [vmem:[#allocation10 + $0x170] sm:$0xff] }
 0x3a9   :  { %4618 = vmatpush1.bf16.msra.mxu1 %v4617_v4  ;;  %v3186_v4 = vld [vmem:[%s6175_s13 + $0x170] sm:$0xff] }
 0x3aa   :  { %4620 = vmatprep.subr.bf16.mxu1 %v4619_v5  ;;  %v4645_v5 = vpack.c.bf16 %v3186_v4, %v3184_v3 }
 0x3ad   :  { %4622 = vmatpush1.bf16.msra.mxu1 %v4621_v9  ;;  %v3190_v9 = vld [vmem:[%s6175_s13 + $0x190] sm:$0xff] }
 0x3ae   :  { %4624 = vmatprep.subr.bf16.mxu1 %v4623_v10  ;;  %v4649_v10 = vpack.c.bf16 %v3190_v9, %v3188_v8 }
 0x3b1   :  { %4626 = vmatpush1.bf16.msra.mxu1 %v4625_v0  ;;  %v3194_v0 = vld [vmem:[%s6175_s13 + $0x1b0] sm:$0xff] }
 0x3b2   :  { %4628 = vmatprep.subr.bf16.mxu1 %v4627_v16  ;;  %v3197_v16 = vld [vmem:[%s6175_s13 + $0x1c8] sm:$0xff]  ;;  %v4653_v18 = vpack.c.bf16 %v3194_v0, %v3192_v14  ;;  %v3334_v14 = vld [vmem:[#allocation10 + $0x118] sm:$0xff] }
 0x3b3   :  { %v4655_v19 = vpack.c.bf16 %v3199_v17, %v3197_v16  ;;  %v4695_v0 = vpack.c.bf16 %v3334_v14, %v3332_v13  ;;  %v3331_v16 = vld [vmem:[#allocation10 + $0x100] sm:$0xff]  ;;  %v3333_v17 = vld [vmem:[#allocation10 + $0x110] sm:$0xff]  ;;  %v3362_v13 = vld [vmem:[#allocation10 + $0x1f8] sm:$0xff] }
 0x3b5   :  { %4630 = vmatpush1.bf16.msra.mxu1 %v4629_v21  ;;  %v3198_v21 = vld [vmem:[%s6175_s13 + $0x1d0] sm:$0xff] }
 0x3b6   :  { %4632 = vmatprep.subr.bf16.mxu1 %v4631_v22  ;;  %v3201_v22 = vld [vmem:[%s6175_s13 + $0x1e8] sm:$0xff]  ;;  %v4657_v26 = vpack.c.bf16 %v3198_v21, %v3196_v20  ;;  %v4697_v20 = vpack.c.bf16 %v3333_v17, %v3331_v16  ;;  %v3361_v16 = vld [vmem:[#allocation10 + $0x1f0] sm:$0xff] }
 0x3b7   :  { %v4659_v27 = vpack.c.bf16 %v3203_v23, %v3201_v22  ;;  %v3335_v22 = vld [vmem:[#allocation10 + $0x120] sm:$0xff]  ;;  %v3337_v23 = vld [vmem:[#allocation10 + $0x130] sm:$0xff] }
 0x3b9   :  { %4634 = vmatpush1.bf16.msra.mxu1 %v4633_v30  ;;  %v3202_v30 = vld [vmem:[%s6175_s13 + $0x1f0] sm:$0xff] }
 0x3ba   :  { %4636 = vmatprep.subr.bf16.mxu1 %v4635_v32  ;;  %v4661_v32 = vpack.c.bf16 %v3202_v30, %v3200_v29  ;;  %v4701_v29 = vpack.c.bf16 %v3337_v23, %v3335_v22  ;;  %v3459_v22 = vld [vmem:[%s6179_s17 + $0x8] sm:$0xff]  ;;  %v3476_v23 = vld [vmem:[%s6179_s17 + $0x90] sm:$0xff] }
 0x3bd   :  { %4638 = vmatpush1.bf16.msra.mxu1 %v4637_v39  ;;  %v3301_v39 = vld [vmem:[#allocation10 + $0x10] sm:$0xff] }
 0x3be   :  { %4640 = vmatprep.subr.bf16.mxu1 %v4639_v40  ;;  %v3304_v40 = vld [vmem:[#allocation10 + $0x28] sm:$0xff] }
 0x3c1   :  { %4642 = vmatpush1.bf16.msra.mxu1 %v4641_v63  ;;  %v3319_v63 = vld [vmem:[#allocation10 + $0xa0] sm:$0xff] }
 0x3c2   :  { %4644 = vmatprep.subr.bf16.mxu1 %v4643_v2  ;;  %v3326_v2 = vld [vmem:[#allocation10 + $0xd8] sm:$0xff]  ;;  %v4685_v3 = vpack.c.bf16 %v3321_v11, %v3319_v63  ;;  %v3349_v63 = vld [vmem:[#allocation10 + $0x190] sm:$0xff] }
 0x3c3   :  { %v4687_v4 = vpack.c.bf16 %v3326_v2, %v3324_v34  ;;  %v3352_v34 = vld [vmem:[#allocation10 + $0x1a8] sm:$0xff]  ;;  %v3354_v2 = vld [vmem:[#allocation10 + $0x1b8] sm:$0xff] }
 0x3c5   :  { %4646 = vmatpush1.bf16.msra.mxu1 %v4645_v5  ;;  %v3323_v5 = vld [vmem:[#allocation10 + $0xc0] sm:$0xff] }
 0x3c6   :  { %4648 = vmatprep.subr.bf16.mxu1 %v4647_v7  ;;  %v3330_v7 = vld [vmem:[#allocation10 + $0xf8] sm:$0xff]  ;;  %v4689_v8 = vpack.c.bf16 %v3325_v25, %v3323_v5  ;;  %v3353_v5 = vld [vmem:[#allocation10 + $0x1b0] sm:$0xff]  ;;  %v3356_v25 = vld [vmem:[#allocation10 + $0x1c8] sm:$0xff] }
 0x3c7   :  { %v4691_v9 = vpack.c.bf16 %v3330_v7, %v3328_v6  ;;  %v3358_v6 = vld [vmem:[#allocation10 + $0x1d8] sm:$0xff] }
 0x3c9   :  { %4650 = vmatpush1.bf16.msra.mxu1 %v4649_v10  ;;  %v3327_v10 = vld [vmem:[#allocation10 + $0xe0] sm:$0xff] }
 0x3ca   :  { %4652 = vmatprep.subr.bf16.mxu1 %v4651_v15  ;;  %v4693_v15 = vpack.c.bf16 %v3329_v12, %v3327_v10  ;;  %v3357_v10 = vld [vmem:[#allocation10 + $0x1d0] sm:$0xff]  ;;  %v3360_v12 = vld [vmem:[#allocation10 + $0x1e8] sm:$0xff] }
 0x3cd   :  { %4654 = vmatpush1.bf16.msra.mxu1 %v4653_v18  ;;  %v3336_v18 = vld [vmem:[#allocation10 + $0x128] sm:$0xff] }
 0x3ce   :  { %4656 = vmatprep.subr.bf16.mxu1 %v4655_v19  ;;  %v3338_v19 = vld [vmem:[#allocation10 + $0x138] sm:$0xff] }
 0x3cf   :  { %v4699_v21 = vpack.c.bf16 %v3338_v19, %v3336_v18  ;;  %v3474_v18 = vld [vmem:[%s6179_s17 + $0x80] sm:$0xff]  ;;  %v3475_v19 = vld [vmem:[%s6179_s17 + $0x88] sm:$0xff] }
 0x3d1   :  { %4658 = vmatpush1.bf16.msra.mxu1 %v4657_v26  ;;  %v3340_v26 = vld [vmem:[#allocation10 + $0x148] sm:$0xff] }
 0x3d2   :  { %4660 = vmatprep.subr.bf16.mxu1 %v4659_v27  ;;  %v3342_v27 = vld [vmem:[#allocation10 + $0x158] sm:$0xff] }
 0x3d3   :  { %v4703_v30 = vpack.c.bf16 %v3342_v27, %v3340_v26  ;;  %v3477_v26 = vld [vmem:[%s6179_s17 + $0x98] sm:$0xff] }
 0x3d5   :  { %4662 = vmatpush1.bf16.msra.mxu1 %v4661_v32  ;;  %v3116_v32 = vlaneseq }
 0x3d7   :  { %v3117_v33 = vshrl.u32 %v3116_v32, 7  ;;  %v3461_v32 = vld [vmem:[%s6179_s17 + $0x18] sm:$0xff] }
 0x3d9   :  { %v6044_v36 = vsub.s32 0, %v3117_v33 }
 0x46b   :  { %v2924_v42 = vpop.f32.mrb[16].mxu1 }
 0x46c   :  { %v4767_v43 = vadd.f32 %v3697_v41, %v2924_v42  ;;  %v4338_v44 = vpop.f32.mrb[17].mxu1  ;;  %v3306_v41 = vld [vmem:[#allocation10 + $0x38] sm:$0xff]  ;;  %v4665_v42 = vpack.c.bf16 %v3301_v39, %v3299_v37 }
 0x46d   :  { %v3303_v44 = vld [vmem:[#allocation10 + $0x20] sm:$0xff]  ;;  %v3114_v37 = vld [vmem:[#allocation7] sm:$0x3] }
 0x46e   :  { %v2930_v45 = vmin.f32 %v4767_v43, 0.0  ;;  %vm2929_vm0 = vcmp.gt.f32.partialorder %v4767_v43, 0.0  ;;  %v3119_v39 = vrot.slane %v3114_v37, %v6044_v36 }
 0x470   :  { %v2931_v46 = vmul.f32 1.442695, %v2930_v45  ;;  %v3305_v45 = vld [vmem:[#allocation10 + $0x30] sm:$0xff] }
 0x471   :  { %v4669_v48 = vpack.c.bf16 %v3305_v45, %v3303_v44 }
 0x472   :  { %4850 = vpow2.f32 %v2931_v46  ;;  %v3308_v46 = vld [vmem:[#allocation10 + $0x48] sm:$0xff] }
 0x473   :  { %v4671_v49 = vpack.c.bf16 %v3310_v47, %v3308_v46 }
 0x47c   :  { %v4851_v51 = vpop.eup %4850 }
 0x47d   :  { %v3706_v52 = vadd.f32 -1.0, %v4851_v51  ;;  %v3309_v51 = vld [vmem:[#allocation10 + $0x50] sm:$0xff] }
 0x47f   :  { %v2934_v35 = vsel %vm2929_vm0, %v4767_v43, %v3706_v52  ;;  %v4667_v43 = vpack.c.bf16 %v3306_v41, %v3304_v40  ;;  %v3312_v52 = vld [vmem:[#allocation10 + $0x68] sm:$0xff] }
 0x480   :  { %3709 = vmatmul.mubr.msk.f32.vlgmr.msra.gmra.mrb[20].mxu0 %vm2207_vm7, %v2934_v35  ;;  %v3313_v35 = vld [vmem:[#allocation10 + $0x70] sm:$0xff] }
 0x481   :  { %4588 = vmatpush1.bf16.msra.mxu0 %v4587_v53  ;;  %3107 = vmatprep.mubr.f32.mxu0 %v5061_v1  ;;  %v2935_v1 = vld [vmem:[%s6197_s15] sm:$0x3] }
 0x482   :  { %4590 = vmatprep.subr.bf16.mxu0 %v4589_v54  ;;  %v3314_v53 = vld [vmem:[#allocation10 + $0x78] sm:$0xff]  ;;  %v4673_v54 = vpack.c.bf16 %v3309_v51, %v3307_v50 }
 0x483   :  { %v4675_v55 = vpack.c.bf16 %v3314_v53, %v3312_v52 }
 0x485   :  { %4592 = vmatpush1.bf16.msra.mxu0 %v4591_v59  ;;  %v4677_v59 = vpack.c.bf16 %v3313_v35, %v3311_v56  ;;  %v3341_v56 = vld [vmem:[#allocation10 + $0x150] sm:$0xff] }
 0x486   :  { %4595 = vmatprep.subr.msk.bf16.mxu0 %vm5294_vm3, %v4593_v24  ;;  %v4679_v24 = vpack.c.bf16 %v3318_v58, %v3316_v57  ;;  %v3344_v57 = vld [vmem:[#allocation10 + $0x168] sm:$0xff]  ;;  %v3346_v58 = vld [vmem:[#allocation10 + $0x178] sm:$0xff] }
 0x489   :  { %4598 = vmatpush1.bf16.msk.msra.mxu0 %vm5294_vm3, %v4596_v28  ;;  %v3320_v28 = vld [vmem:[#allocation10 + $0xa8] sm:$0xff] }
 0x48a   :  { %4664 = vmatprep.subr.bf16.mxu0 %v4663_v38  ;;  %v6046_v38 = vsub.s32 1, %v3117_v33  ;;  %v3478_v33 = vld [vmem:[%s6179_s17 + $0xa0] sm:$0xff] }
 0x48c   :  { %3712 = vmatmul.mubr.msk.f32.vlgmr.msra.gmra.mrb[20].mxu0 %vm160_vm4, %v2935_v1  ;;  %v3322_v1 = vld [vmem:[#allocation10 + $0xb8] sm:$0xff]  ;;  %v3123_v40 = vrot.slane %v3114_v37, %v6046_v38  ;;  %v3479_v37 = vld [vmem:[%s6179_s17 + $0xa8] sm:$0xff] }
 0x48d   :  { %4666 = vmatpush1.bf16.msra.mxu0 %v4665_v42  ;;  %v4683_v31 = vpack.c.bf16 %v3322_v1, %v3320_v28  ;;  %v3348_v28 = vld [vmem:[#allocation10 + $0x188] sm:$0xff]  ;;  %v3350_v1 = vld [vmem:[#allocation10 + $0x198] sm:$0xff] }
 0x48e   :  { %4668 = vmatprep.subr.bf16.mxu0 %v4667_v43 }
 0x491   :  { %4670 = vmatpush1.bf16.msra.mxu0 %v4669_v48 }
 0x492   :  { %4672 = vmatprep.subr.bf16.mxu0 %v4671_v49 }
 0x495   :  { %4674 = vmatpush1.bf16.msra.mxu0 %v4673_v54 }
 0x496   :  { %4676 = vmatprep.subr.bf16.mxu0 %v4675_v55  ;;  %v3339_v55 = vld [vmem:[#allocation10 + $0x140] sm:$0xff] }
 0x497   :  { %v4705_v35 = vpack.c.bf16 %v3341_v56, %v3339_v55 }
 0x499   :  { %4678 = vmatpush1.bf16.msra.mxu0 %v4677_v59  ;;  %v4707_v59 = vpack.c.bf16 %v3346_v58, %v3344_v57  ;;  %v3462_v57 = vld [vmem:[%s6179_s17 + $0x20] sm:$0xff]  ;;  %v3463_v58 = vld [vmem:[%s6179_s17 + $0x28] sm:$0xff] }
 0x49a   :  { %4680 = vmatprep.subr.bf16.mxu0 %v4679_v24  ;;  %v3343_v24 = vld [vmem:[#allocation10 + $0x160] sm:$0xff] }
 0x49b   :  { %v4709_v61 = vpack.c.bf16 %v3345_v60, %v3343_v24  ;;  %v3480_v24 = vld [vmem:[%s6179_s17 + $0xb0] sm:$0xff]  ;;  %v3481_v60 = vld [vmem:[%s6179_s17 + $0xb8] sm:$0xff] }
 0x49d   :  { %4682 = vmatpush1.bf16.msra.mxu0 %v4681_v62  ;;  %v4711_v62 = vpack.c.bf16 %v3350_v1, %v3348_v28  ;;  %v3464_v28 = vld [vmem:[%s6179_s17 + $0x30] sm:$0xff]  ;;  %v3465_v1 = vld [vmem:[%s6179_s17 + $0x38] sm:$0xff] }
 0x49e   :  { %4684 = vmatprep.subr.bf16.mxu0 %v4683_v31  ;;  %v3347_v31 = vld [vmem:[#allocation10 + $0x180] sm:$0xff] }
 0x49f   :  { %v4713_v11 = vpack.c.bf16 %v3349_v63, %v3347_v31  ;;  %v3482_v31 = vld [vmem:[%s6179_s17 + $0xc0] sm:$0xff]  ;;  %v3483_v63 = vld [vmem:[%s6179_s17 + $0xc8] sm:$0xff] }
 0x4a1   :  { %4686 = vmatpush1.bf16.msra.mxu0 %v4685_v3  ;;  %v3351_v3 = vld [vmem:[#allocation10 + $0x1a0] sm:$0xff] }
 0x4a2   :  { %4688 = vmatprep.subr.bf16.mxu0 %v4687_v4  ;;  %v4715_v4 = vpack.c.bf16 %v3354_v2, %v3352_v34  ;;  %v4717_v7 = vpack.c.bf16 %v3353_v5, %v3351_v3  ;;  %v3466_v34 = vld [vmem:[%s6179_s17 + $0x40] sm:$0xff]  ;;  %v3467_v2 = vld [vmem:[%s6179_s17 + $0x48] sm:$0xff]  ;;  %v3485_v5 = vld [vmem:[%s6179_s17 + $0xd8] sm:$0xff] }
 0x4a3   :  { %v4745_v3 = vpack.c.bf16 %v3467_v2, %v3466_v34 }
 0x4a5   :  { %4690 = vmatpush1.bf16.msra.mxu0 %v4689_v8  ;;  %v4719_v8 = vpack.c.bf16 %v3358_v6, %v3356_v25  ;;  %v3468_v25 = vld [vmem:[%s6179_s17 + $0x50] sm:$0xff] }
 0x4a6   :  { %4692 = vmatprep.subr.bf16.mxu0 %v4691_v9  ;;  %v3355_v9 = vld [vmem:[#allocation10 + $0x1c0] sm:$0xff] }
 0x4a7   :  { %v4721_v14 = vpack.c.bf16 %v3357_v10, %v3355_v9  ;;  %v3487_v9 = vld [vmem:[%s6179_s17 + $0xe8] sm:$0xff] }
 0x4a9   :  { %4694 = vmatpush1.bf16.msra.mxu0 %v4693_v15  ;;  %v4723_v15 = vpack.c.bf16 %v3362_v13, %v3360_v12  ;;  %v3470_v13 = vld [vmem:[%s6179_s17 + $0x60] sm:$0xff] }
 0x4aa   :  { %4696 = vmatprep.subr.bf16.mxu0 %v4695_v0  ;;  %v3359_v0 = vld [vmem:[#allocation10 + $0x1e0] sm:$0xff] }
 0x4ab   :  { %v4725_v17 = vpack.c.bf16 %v3361_v16, %v3359_v0  ;;  %v3489_v0 = vld [vmem:[%s6179_s17 + $0xf8] sm:$0xff] }
 0x4ad   :  { %4698 = vmatpush1.bf16.msra.mxu0 %v4697_v20  ;;  %v3458_v20 = vld [vmem:[%s6179_s17] sm:$0xff] }
 0x4ae   :  { %4700 = vmatprep.subr.bf16.mxu0 %v4699_v21  ;;  %v4727_v21 = vpack.c.bf16 %v3475_v19, %v3474_v18  ;;  %v4729_v27 = vpack.c.bf16 %v3459_v22, %v3458_v20  ;;  %v3472_v18 = vld [vmem:[%s6179_s17 + $0x70] sm:$0xff]  ;;  %v3473_v19 = vld [vmem:[%s6179_s17 + $0x78] sm:$0xff] }
 0x4af   :  { %v4757_v20 = vpack.c.bf16 %v3473_v19, %v3472_v18 }
 0x4b0   :  { %4728 = vmatprep.subr.bf16.mxu1 %v4727_v21  ;;  %v3363_v21 = vld [vmem:[#allocation11] sm:$0x3] }
 0x4b1   :  { %4702 = vmatpush1.bf16.msra.mxu0 %v4701_v29  ;;  %v4731_v29 = vpack.c.bf16 %v3477_v26, %v3476_v23  ;;  %v3368_v22 = vrot.slane %v3363_v21, %v6044_v36  ;;  %v3372_v23 = vrot.slane %v3363_v21, %v6046_v38 }
 0x4b2   :  { %4704 = vmatprep.subr.bf16.mxu0 %v4703_v30  ;;  %v3460_v30 = vld [vmem:[%s6179_s17 + $0x10] sm:$0xff] }
 0x4b5   :  { %4706 = vmatpush1.bf16.msra.mxu0 %v4705_v35 }
 0x4b6   :  { %4708 = vmatprep.subr.bf16.mxu0 %v4707_v59  ;;  %v4737_v59 = vpack.c.bf16 %v3463_v58, %v3462_v57 }
 0x4b9   :  { %4710 = vmatpush1.bf16.msra.mxu0 %v4709_v61  ;;  %v4739_v61 = vpack.c.bf16 %v3481_v60, %v3480_v24 }
 0x4ba   :  { %4712 = vmatprep.subr.bf16.mxu0 %v4711_v62  ;;  %v4741_v62 = vpack.c.bf16 %v3465_v1, %v3464_v28 }
 0x4bd   :  { %4714 = vmatpush1.bf16.msra.mxu0 %v4713_v11  ;;  %v4743_v11 = vpack.c.bf16 %v3483_v63, %v3482_v31 }
 0x4be   :  { %4716 = vmatprep.subr.bf16.mxu0 %v4715_v4  ;;  %v3484_v4 = vld [vmem:[%s6179_s17 + $0xd0] sm:$0xff] }
 0x4bf   :  { %v4747_v6 = vpack.c.bf16 %v3485_v5, %v3484_v4 }
 0x4c1   :  { %4718 = vmatpush1.bf16.msra.mxu0 %v4717_v7  ;;  %v3469_v7 = vld [vmem:[%s6179_s17 + $0x58] sm:$0xff] }
 0x4c2   :  { %4720 = vmatprep.subr.bf16.mxu0 %v4719_v8  ;;  %v3486_v8 = vld [vmem:[%s6179_s17 + $0xe0] sm:$0xff]  ;;  %v4749_v10 = vpack.c.bf16 %v3469_v7, %v3468_v25 }
 0x4c3   :  { %v4751_v12 = vpack.c.bf16 %v3487_v9, %v3486_v8 }
 0x4c5   :  { %4722 = vmatpush1.bf16.msra.mxu0 %v4721_v14  ;;  %v3471_v14 = vld [vmem:[%s6179_s17 + $0x68] sm:$0xff] }
 0x4c6   :  { %4724 = vmatprep.subr.bf16.mxu0 %v4723_v15  ;;  %v3488_v15 = vld [vmem:[%s6179_s17 + $0xf0] sm:$0xff]  ;;  %v4753_v16 = vpack.c.bf16 %v3471_v14, %v3470_v13  ;;  %s5063_s17 = smov [#allocation14]  }
 0x4c7   :  { %s3575_s6 = sshll.u32 %s5063_s17, 4  ;;  %s3576_s6 = int_to_ptr.vmem [resolvable:$true] %s3575_s6 }
 0x4c8   :  { %s5018_s28 = scalar_lea.vmem %s3576_s6, 32  ;;  %p5023_p1 = scmp.lt.s32.totalorder %s3576_s6, %s3576_s6 }
 0x4c9   :  { %4726 = vmatpush1.bf16.msra.mxu0 %v4725_v17  ;;  %v4755_v17 = vpack.c.bf16 %v3489_v0, %v3488_v15  ;;  %p5019_p0 = scmp.ne.s32.totalorder %s3576_s6, %s5018_s28  ;;  %p5024_p2 = scmp.lt.s32.totalorder %s5018_s28, %s5018_s28 }
 0x4cb   :  { %p5025_p3 = por %p5024_p2, %p5023_p1 }
 0x4cd   :  { %p5026_p4 = pnand %p5025_p3, %p5019_p0 }
 0x55f   :  { %v3109_v41 = vpop.f32.mrb[20].mxu0 }
 0x560   :  { %v3126_v42 = vadd.f32 %v3119_v39, %v3109_v41  ;;  %v3111_v43 = vpop.f32.mrb[21].mxu0  ;;  %v4733_v39 = vpack.c.bf16 %v3461_v32, %v3460_v30  ;;  %v3204_v41 = vld [vmem:[#allocation8] sm:$0x3] }
 0x561   :  { %v3127_v44 = vadd.f32 %v3123_v40, %v3111_v43  ;;  %v4735_v40 = vpack.c.bf16 %v3479_v37, %v3478_v33  ;;  %v3213_v43 = vrot.slane %v3204_v41, %v6046_v38 }
 0x562   :  { %v3130_v45 = vmin.f32 %v3126_v42, 0.0  ;;  %vm3128_vm4 = vcmp.gt.f32.partialorder %v3126_v42, 0.0 }
 0x563   :  { %v3131_v46 = vmin.f32 %v3127_v44, 0.0  ;;  %vm3129_vm3 = vcmp.gt.f32.partialorder %v3127_v44, 0.0 }
 0x564   :  { %v3132_v47 = vmul.f32 1.442695, %v3130_v45 }
 0x565   :  { %v3134_v48 = vmul.f32 1.442695, %v3131_v46 }
 0x566   :  { %4852 = vpow2.f32 %v3132_v47 }
 0x567   :  { %4854 = vpow2.f32 %v3134_v48 }
 0x570   :  { %v4853_v49 = vpop.eup %4852 }
 0x571   :  { %v4855_v50 = vpop.eup %4854  ;;  %v3713_v51 = vadd.f32 -1.0, %v4853_v49 }
 0x572   :  { %v3714_v52 = vadd.f32 -1.0, %v4855_v50 }
 0x573   :  { %v3138_v54 = vsel %vm3128_vm4, %v3126_v42, %v3713_v51  ;;  %v3209_v42 = vrot.slane %v3204_v41, %v6044_v36 }
 0x574   :  { %v3139_v53 = vsel %vm3129_vm3, %v3127_v44, %v3714_v52 }
 0x575   :  { %3280 = vmatprep.mubr.f32.mxu1 %v3139_v53 }
 0x576   :  { %3281 = vmatmul.mubr.f32.vlgmr.msra.gmra.mrb[18].mxu1 %v3138_v54 }
 0x577   :  { %4730 = vmatpush3.bf16.msra.mxu1 %v4729_v27 }
 0x578   :  { %4732 = vmatprep.subr.bf16.mxu1 %v4731_v29 }
 0x57b   :  { %4734 = vmatpush3.bf16.msra.mxu1 %v4733_v39 }
 0x57c   :  { %4736 = vmatprep.subr.bf16.mxu1 %v4735_v40 }
 0x57f   :  { %4738 = vmatpush3.bf16.msra.mxu1 %v4737_v59 }
 0x580   :  { %4740 = vmatprep.subr.bf16.mxu1 %v4739_v61 }
 0x583   :  { %4742 = vmatpush3.bf16.msra.mxu1 %v4741_v62 }
 0x584   :  { %4744 = vmatprep.subr.bf16.mxu1 %v4743_v11 }
 0x587   :  { %4746 = vmatpush3.bf16.msra.mxu1 %v4745_v3 }
 0x588   :  { %4748 = vmatprep.subr.bf16.mxu1 %v4747_v6 }
 0x58b   :  { %4750 = vmatpush3.bf16.msra.mxu1 %v4749_v10 }
 0x58c   :  { %4752 = vmatprep.subr.bf16.mxu1 %v4751_v12 }
 0x58f   :  { %4754 = vmatpush3.bf16.msra.mxu1 %v4753_v16 }
 0x590   :  { %4756 = vmatprep.subr.bf16.mxu1 %v4755_v17 }
 0x593   :  { %4758 = vmatpush3.bf16.msra.mxu1 %v4757_v20 }
 0x649   :  { %v3282_v44 = vpop.f32.mrb[18].mxu1 }
 0x64a   :  { %v3283_v45 = vadd.f32 %v3282_v44, %v3209_v42  ;;  %v3284_v46 = vpop.f32.mrb[19].mxu1 }
 0x64b   :  { %v3285_v47 = vadd.f32 %v3284_v46, %v3213_v43 }
 0x64c   :  { %v3289_v48 = vmin.f32 %v3283_v45, 0.0  ;;  %vm3287_vm6 = vcmp.gt.f32.partialorder %v3283_v45, 0.0 }
 0x64d   :  { %v3290_v49 = vmin.f32 %v3285_v47, 0.0  ;;  %vm3288_vm5 = vcmp.gt.f32.partialorder %v3285_v47, 0.0 }
 0x64e   :  { %v3291_v50 = vmul.f32 1.442695, %v3289_v48 }
 0x64f   :  { %v3293_v51 = vmul.f32 1.442695, %v3290_v49 }
 0x650   :  { %4856 = vpow2.f32 %v3291_v50 }
 0x651   :  { %4858 = vpow2.f32 %v3293_v51 }
 0x65a   :  { %v4857_v52 = vpop.eup %4856 }
 0x65b   :  { %v4859_v53 = vpop.eup %4858  ;;  %v3715_v54 = vadd.f32 -1.0, %v4857_v52 }
 0x65c   :  { %v3716_v55 = vadd.f32 -1.0, %v4859_v53 }
 0x65d   :  { %v3297_v35 = vsel %vm3287_vm6, %v3283_v45, %v3715_v54  ;;  %v3719_v45 = vld [vmem:[#allocation13] ss:$0 sm:$0xff] }
 0x65e   :  { %v3298_v56 = vsel %vm3288_vm5, %v3285_v47, %v3716_v55 }
 0x65f   :  { %3439 = vmatprep.mubr.f32.mxu0 %v3298_v56 }
 0x660   :  { %3440 = vmatmul.mubr.f32.vlgmr.msra.gmra.mrb[22].mxu0 %v3297_v35 }
 0x733   :  { %v3441_v26 = vpop.f32.mrb[22].mxu0 }
 0x734   :  { %v3442_v27 = vadd.f32 %v3441_v26, %v3368_v22  ;;  %v3443_v29 = vpop.f32.mrb[23].mxu0 }
 0x735   :  { %v3444_v30 = vadd.f32 %v3443_v29, %v3372_v23 }
 0x736   :  { %v3448_v32 = vmin.f32 %v3442_v27, 0.0  ;;  %vm3446_vm8 = vcmp.gt.f32.partialorder %v3442_v27, 0.0 }
 0x737   :  { %v3449_v33 = vmin.f32 %v3444_v30, 0.0  ;;  %vm3447_vm7 = vcmp.gt.f32.partialorder %v3444_v30, 0.0 }
 0x738   :  { %v3450_v37 = vmul.f32 1.442695, %v3448_v32 }
 0x739   :  { %v3452_v39 = vmul.f32 1.442695, %v3449_v33 }
 0x73a   :  { %4860 = vpow2.f32 %v3450_v37 }
 0x73b   :  { %4862 = vpow2.f32 %v3452_v39 }
 0x744   :  { %v4861_v40 = vpop.eup %4860 }
 0x745   :  { %v4863_v41 = vpop.eup %4862  ;;  %v3717_v42 = vadd.f32 -1.0, %v4861_v40 }
 0x746   :  { %v3718_v43 = vadd.f32 -1.0, %v4863_v41 }
 0x747   :  { %v3456_v36 = vsel %vm3446_vm8, %v3442_v27, %v3717_v42 }
 0x748   :  { %v3457_v44 = vsel %vm3447_vm7, %v3444_v30, %v3718_v43 }
 0x749   :  { %3561 = vmatprep.mubr.f32.mxu1 %v3457_v44 }
 0x74a   :  { %3562 = vmatmul.mubr.f32.vlgmr.msra.gmra.mrb[20].mxu1 %v3456_v36 }
 0x81d   :  { %v3935_v38 = vpop.f32.mrb[20].mxu1 }
 0x81e   :  { %v3936_v46 = vpop.f32.mrb[21].mxu1 }
 0x81f   :  { %v3937_v47 = vadd.f32 %v3936_v46, %v3935_v38 }
 0x821   :  { %v3564_v48 = vadd.f32 %v3937_v47, %v3719_v45 }
 0x823   :  { %3568 = vst.msk [vmem:[#allocation14] sm:$0x3] %vm3567_vm9, %v3564_v48 }
 0x824   :  { %5029 = shalt.err (!%p5026_p4)
}
 0x825   :  { %s5030_s20 = scalar_lea.hbm %s6181_s19, 32 }
 0x826   :  { %p5031_p5 = scmp.ne.s32.totalorder %s6181_s19, %s5030_s20  ;;  %p5034_p6 = scmp.lt.u32.totalorder %s5030_s20, %s6181_s19 }
 0x828   :  { %p5036_p7 = pnand %p5034_p6, %p5031_p5 }
 0x82a   :  { %5039 = shalt.err (!%p5036_p7)
}
 0x82b   :  { %3578 = dma.vmem_to_hbm [thread:$0]  %s3576_s6, 32, %s6181_s19, [#allocation4]  }
 0x82c   :  { %5048 = dma.done.wait [#allocation4], 32  }
 0x82d   :  { %5049 = vsyncadd [#allocation4], 4294967264 }
 0x82e   :  { %3582 = vsyncpa [#allocation3], 1 }
 0x82f   :  { %3583 = vsyncpa [#allocation6], 1 }
 0x830   :  { %3584 = vsyncpa [#allocation9], 1 }
 0x831   :  { %3585 = vsyncpa [#allocation12], 1 }
 0x832   :  { %3586 = vsyncpa [#allocation4], 1 }

</bundles_post_ra>
